<compile_context>
chip_gen: v7x
topology: tpu7x:2x2x1
jax: 0.10.0
libtpu: 0.0.40
codegen_flags: <defaults>
</compile_context>

<pallas_src>
import functools

import jax
import jax.numpy as jnp
from jax.experimental import pallas as pl
from jax.experimental.pallas import tpu as pltpu

# ----------------------------- config (small) -----------------------------
B = 2          # batch
S = 16         # sequence length
D = 128        # embed_dim
H = 4          # num attention heads
HD = D // H    # head_dim = 32
I = 256        # mlp intermediate size
EPS = 1e-6     # Siglip LayerNorm eps


def _layer_norm(v, gamma, beta):
    mu = jnp.mean(v, axis=-1, keepdims=True)
    var = jnp.mean((v - mu) ** 2, axis=-1, keepdims=True)
    return (v - mu) * jax.lax.rsqrt(var + EPS) * gamma + beta


def _gelu_tanh(x):
    # gelu_pytorch_tanh
    return 0.5 * x * (1.0 + jnp.tanh(0.7978845608028654 * (x + 0.044715 * x * x * x)))


# ------------------------------- the kernel -------------------------------
def encoder_layer_kernel(*refs, num_heads, head_dim, seq_len, batch_tile, has_mask):
    if has_mask:
        (x_ref, mask_ref,
         ln1_g_ref, ln1_b_ref,
         wqkv_ref, bqkv_ref, wo_ref, bo_ref,
         ln2_g_ref, ln2_b_ref,
         w1_ref, b1_ref, w2_ref, b2_ref,
         out_ref, ctx_ref) = refs
    else:
        (x_ref,
         ln1_g_ref, ln1_b_ref,
         wqkv_ref, bqkv_ref, wo_ref, bo_ref,
         ln2_g_ref, ln2_b_ref,
         w1_ref, b1_ref, w2_ref, b2_ref,
         out_ref, ctx_ref) = refs
        mask_ref = None

    s, hd = seq_len, head_dim
    d = num_heads * head_dim
    layer = pl.program_id(1)

    # ---- hidden-state carry lives in the resident output block across the
    #      (arbitrary) layer grid axis; initialize it from x at layer 0. ----
    @pl.when(layer == 0)
    def _():
        out_ref[...] = x_ref[...]

    x = out_ref[...]                                     # (rows, D) f32

    # ---- residual = x ; h = layer_norm1(x) ----
    h = _layer_norm(x, ln1_g_ref[0], ln1_b_ref[0])

    # ---- fused QKV projection (q-scale already folded into Wq/bq) ----
    qkv = jnp.dot(h.astype(jnp.bfloat16), wqkv_ref[...],
                  preferred_element_type=jnp.float32) + bqkv_ref[...]
    # one bf16 cast per tensor, hoisted out of the batch/head loops
    qb = qkv[:, 0:d].astype(jnp.bfloat16)                # 128-aligned lane slices
    kb = qkv[:, d:2 * d].astype(jnp.bfloat16)
    vb = qkv[:, 2 * d:3 * d].astype(jnp.bfloat16)

    # contract the last dims of q_head / k_head -> q @ k^T without an XLU transpose
    dn = (((1,), (1,)), ((), ()))

    # ---- attention: per batch element, per head; write each head's PV result
    #      into its lane slot of a (rows, D) bf16 scratch, project once after. ----
    for bb in range(batch_tile):
        r0 = bb * s
        mb = mask_ref[bb] if has_mask else None          # hoisted: 1 load / batch
        for hh in range(num_heads):
            lo = hh * hd
            scores = jax.lax.dot_general(
                qb[r0:r0 + s, lo:lo + hd], kb[r0:r0 + s, lo:lo + hd],
                dimension_numbers=dn,
                preferred_element_type=jnp.float32)      # (S, S)
            if has_mask:
                scores = scores + mb
            scores = scores - jnp.max(scores, axis=-1, keepdims=True)
            p = jnp.exp(scores)
            p = p * pl.reciprocal(jnp.sum(p, axis=-1, keepdims=True), approx=True)
            hv = jnp.dot(p.astype(jnp.bfloat16), vb[r0:r0 + s, lo:lo + hd],
                         preferred_element_type=jnp.float32)          # (S, HD)
            ctx_ref[r0:r0 + s, lo:lo + hd] = hv.astype(jnp.bfloat16)

    # ---- single K=D output projection for all rows / heads ----
    attn = jnp.dot(ctx_ref[...], wo_ref[...],
                   preferred_element_type=jnp.float32) + bo_ref[...]

    # ---- residual add ----
    x = x + attn

    # ---- layer_norm2 + MLP (fc1 -> gelu_tanh -> fc2) + residual ----
    h2 = _layer_norm(x, ln2_g_ref[0], ln2_b_ref[0])
    t = jnp.dot(h2.astype(jnp.bfloat16), w1_ref[...],
                preferred_element_type=jnp.float32) + b1_ref[...]
    t = _gelu_tanh(t)
    y = jnp.dot(t.astype(jnp.bfloat16), w2_ref[...],
                preferred_element_type=jnp.float32) + b2_ref[...]

    out_ref[...] = x + y


# ------------------------------- wrappers -------------------------------
def prepare_params(raw_layers):
    """Fuse QKV, fold q-scale, cast MXU weights to bf16, stack on a leading
    layer axis so a whole encoder stack runs in one pallas_call."""
    scale = HD ** -0.5

    def stack(fn):
        return jnp.stack([fn(r) for r in raw_layers], axis=0)

    return {
        "ln1_g": stack(lambda r: r["ln1_g"]),
        "ln1_b": stack(lambda r: r["ln1_b"]),
        "wqkv": stack(lambda r: jnp.concatenate(
            [r["wq"] * scale, r["wk"], r["wv"]], axis=1)).astype(jnp.bfloat16),
        "bqkv": stack(lambda r: jnp.concatenate(
            [r["bq"] * scale, r["bk"], r["bv"]], axis=1)),
        "wo": stack(lambda r: r["wo"]).astype(jnp.bfloat16),
        "bo": stack(lambda r: r["bo"]),
        "ln2_g": stack(lambda r: r["ln2_g"]),
        "ln2_b": stack(lambda r: r["ln2_b"]),
        "w1": stack(lambda r: r["w1"]).astype(jnp.bfloat16),
        "b1": stack(lambda r: r["b1"]),
        "w2": stack(lambda r: r["w2"]).astype(jnp.bfloat16),
        "b2": stack(lambda r: r["b2"]),
    }


def siglip_encoder_layers(x, mask, packed, *, batch_tile=None):
    """x: (B,S,D) f32, mask: (B,S,S) f32 additive or None.
    packed: per-layer-stacked params from prepare_params (num_layers=1 gives
    exactly the single SiglipEncoderLayerPostMlpResidual forward).
    Returns (B,S,D) f32."""
    b, s, d = x.shape
    num_layers = packed["wqkv"].shape[0]
    i = packed["w1"].shape[2]
    assert d % 128 == 0, "embed_dim must be lane-aligned (multiple of 128)"
    assert s % 8 == 0, "seq_len must be a multiple of 8 (sublane tiling)"
    if batch_tile is None:
        # Single grid group (best on single-TC v5e/v6e and for tiny B*S).
        # On v7x with large B*S, pass batch_tile=b//2 so the "parallel" group
        # axis puts one batch group on each TensorCore.
        batch_tile = b
    assert b % batch_tile == 0
    groups = b // batch_tile
    rows = batch_tile * s
    has_mask = mask is not None

    x2d = x.reshape(b * s, d)

    def wspec(shape):
        # Per-layer weight block: leading layer axis squeezed, indexed by the
        # (arbitrary) layer grid axis -> layer l+1 auto-prefetches during layer l.
        return pl.BlockSpec((None,) + shape,
                            lambda g, l, _s=shape: (l,) + (0,) * len(_s))

    in_specs = [pl.BlockSpec((rows, d), lambda g, l: (g, 0))]       # x (flattened)
    args = [x2d]
    if has_mask:
        in_specs.append(pl.BlockSpec((batch_tile, s, s), lambda g, l: (g, 0, 0)))
        args.append(mask)
    in_specs += [
        wspec((1, d)), wspec((1, d)),            # ln1 gamma/beta
        wspec((d, 3 * d)), wspec((1, 3 * d)),    # fused Wqkv, bqkv
        wspec((d, d)), wspec((1, d)),            # Wo, bo
        wspec((1, d)), wspec((1, d)),            # ln2 gamma/beta
        wspec((d, i)), wspec((1, i)),            # W1, b1
        wspec((i, d)), wspec((1, d)),            # W2, b2
    ]
    args += [
        packed["ln1_g"], packed["ln1_b"],
        packed["wqkv"], packed["bqkv"],
        packed["wo"], packed["bo"],
        packed["ln2_g"], packed["ln2_b"],
        packed["w1"], packed["b1"],
        packed["w2"], packed["b2"],
    ]

    kernel = functools.partial(
        encoder_layer_kernel,
        num_heads=H, head_dim=HD, seq_len=s,
        batch_tile=batch_tile, has_mask=has_mask)

    out2d = pl.pallas_call(
        kernel,
        out_shape=jax.ShapeDtypeStruct((b * s, d), jnp.float32),
        grid_spec=pltpu.PrefetchScalarGridSpec(
            num_scalar_prefetch=0,
            grid=(groups, num_layers),
            in_specs=in_specs,
            out_specs=pl.BlockSpec((rows, d), lambda g, l: (g, 0)),
            scratch_shapes=[pltpu.VMEM((rows, d), jnp.bfloat16)],   # per-head ctx
        ),
        compiler_params=pltpu.CompilerParams(
            dimension_semantics=("parallel", "arbitrary")),
    )(*args)
    return out2d.reshape(b, s, d)


# --------------------------- pure-JAX reference ---------------------------
def reference_layer(x, mask, p):
    b, s, d = x.shape
    res = x
    h = _layer_norm(x, p["ln1_g"][0], p["ln1_b"][0])
    q = h @ p["wq"] + p["bq"][0]
    k = h @ p["wk"] + p["bk"][0]
    v = h @ p["wv"] + p["bv"][0]
    q = q * (HD ** -0.5)
    qh = q.reshape(b, s, H, HD).transpose(0, 2, 1, 3)
    kh = k.reshape(b, s, H, HD).transpose(0, 2, 1, 3)
    vh = v.reshape(b, s, H, HD).transpose(0, 2, 1, 3)
    scores = jnp.einsum("bhqd,bhkd->bhqk", qh, kh)
    if mask is not None:
        scores = scores + mask[:, None, :, :]
    pattn = jax.nn.softmax(scores, axis=-1)
    attn = jnp.einsum("bhqk,bhkd->bhqd", pattn, vh).transpose(0, 2, 1, 3).reshape(b, s, d)
    attn = attn @ p["wo"] + p["bo"][0]
    x = res + attn
    res = x
    h2 = _layer_norm(x, p["ln2_g"][0], p["ln2_b"][0])
    h2 = h2 @ p["w1"] + p["b1"][0]
    h2 = _gelu_tanh(h2)
    h2 = h2 @ p["w2"] + p["b2"][0]
    return res + h2


def reference_stack(x, mask, raw_layers):
    for p in raw_layers:
        x = reference_layer(x, mask, p)
    return x


if __name__ == "__main__":
    key = jax.random.PRNGKey(0)

    def make_raw(k):
        ks = jax.random.split(k, 12)

        def init(kk, shape, scale=0.02):
            return (scale * jax.random.normal(kk, shape)).astype(jnp.float32)

        return {
            "ln1_g": jnp.ones((1, D), jnp.float32),
            "ln1_b": jnp.zeros((1, D), jnp.float32),
            "wq": init(ks[0], (D, D)), "bq": init(ks[1], (1, D)),
            "wk": init(ks[2], (D, D)), "bk": init(ks[3], (1, D)),
            "wv": init(ks[4], (D, D)), "bv": init(ks[5], (1, D)),
            "wo": init(ks[6], (D, D)), "bo": init(ks[7], (1, D)),
            "ln2_g": jnp.ones((1, D), jnp.float32),
            "ln2_b": jnp.zeros((1, D), jnp.float32),
            "w1": init(ks[8], (D, I)), "b1": init(ks[9], (1, I)),
            "w2": init(ks[10], (I, D)), "b2": init(ks[11], (1, D)),
        }

    k_layers, k_x, k_m = jax.random.split(key, 3)
    raw0 = make_raw(jax.random.fold_in(k_layers, 0))
    packed1 = prepare_params([raw0])

    x = jax.random.normal(k_x, (B, S, D), jnp.float32)
    mask = 0.5 * jax.random.normal(k_m, (B, S, S), jnp.float32)

    # Path 1: single layer (exact module semantics), explicit additive mask.
    out_m = jax.block_until_ready(siglip_encoder_layers(x, mask, packed1))
    ref_m = reference_stack(x, mask, [raw0])
    assert out_m.shape == (B, S, D)
    assert bool(jnp.all(jnp.isfinite(out_m)))
    assert bool(jnp.allclose(out_m, ref_m, rtol=2e-2, atol=2e-2)), "mismatch (mask)"

    # Path 2: single layer, no mask (common SiglipVision case) -> specialized
    # kernel skips the (B,S,S) DMA and the per-head add entirely.
    out_n = jax.block_until_ready(siglip_encoder_layers(x, None, packed1))
    ref_n = reference_stack(x, None, [raw0])
    assert bool(jnp.all(jnp.isfinite(out_n)))
    assert bool(jnp.allclose(out_n, ref_n, rtol=2e-2, atol=2e-2)), "mismatch (no mask)"

    # Path 3: 4 stacked encoder layers in ONE pallas_call (layer grid axis,
    # hidden state carried in the resident output block, weights prefetched).
    raw_layers = [make_raw(jax.random.fold_in(k_layers, i)) for i in range(4)]
    packed4 = prepare_params(raw_layers)
    out_4 = jax.block_until_ready(siglip_encoder_layers(x, mask, packed4))
    ref_4 = reference_stack(x, mask, raw_layers)
    assert bool(jnp.all(jnp.isfinite(out_4)))
    assert bool(jnp.allclose(out_4, ref_4, rtol=3e-2, atol=3e-2)), "mismatch (4 layers)"

    print("KERNEL_OK")
</pallas_src>

<mosaic_0001>
module attributes {stable_mosaic.version = 11 : i64} {
  func.func @encoder_layer_kernel(%arg0: i32, %arg1: i32, %arg2: memref<32x128xf32, #tpu.memory_space<vmem>>, %arg3: memref<2x16x16xf32, #tpu.memory_space<vmem>>, %arg4: memref<1x1x128xf32, #tpu.memory_space<vmem>>, %arg5: memref<1x1x128xf32, #tpu.memory_space<vmem>>, %arg6: memref<1x128x384xbf16, #tpu.memory_space<vmem>>, %arg7: memref<1x1x384xf32, #tpu.memory_space<vmem>>, %arg8: memref<1x128x128xbf16, #tpu.memory_space<vmem>>, %arg9: memref<1x1x128xf32, #tpu.memory_space<vmem>>, %arg10: memref<1x1x128xf32, #tpu.memory_space<vmem>>, %arg11: memref<1x1x128xf32, #tpu.memory_space<vmem>>, %arg12: memref<1x128x256xbf16, #tpu.memory_space<vmem>>, %arg13: memref<1x1x256xf32, #tpu.memory_space<vmem>>, %arg14: memref<1x256x128xbf16, #tpu.memory_space<vmem>>, %arg15: memref<1x1x128xf32, #tpu.memory_space<vmem>>, %arg16: memref<32x128xf32, #tpu.memory_space<vmem>>, %arg17: memref<32x128xbf16, #tpu.memory_space<vmem>>) attributes {dimension_semantics = [#tpu.dimension_semantics<parallel>, #tpu.dimension_semantics<arbitrary>], iteration_bounds = array<i64: 1, 1>, scalar_prefetch = 0 : i64, scratch_operands = 1 : i64, tpu.core_type = #tpu.core_type<tc>, window_params = [{transform_indices = @transform_0, window_bounds = array<i64: 32, 128>}, {transform_indices = @transform_1, window_bounds = array<i64: 2, 16, 16>}, {transform_indices = @transform_2, window_bounds = array<i64: 1, 1, 128>}, {transform_indices = @transform_3, window_bounds = array<i64: 1, 1, 128>}, {transform_indices = @transform_4, window_bounds = array<i64: 1, 128, 384>}, {transform_indices = @transform_5, window_bounds = array<i64: 1, 1, 384>}, {transform_indices = @transform_6, window_bounds = array<i64: 1, 128, 128>}, {transform_indices = @transform_7, window_bounds = array<i64: 1, 1, 128>}, {transform_indices = @transform_8, window_bounds = array<i64: 1, 1, 128>}, {transform_indices = @transform_9, window_bounds = array<i64: 1, 1, 128>}, {transform_indices = @transform_10, window_bounds = array<i64: 1, 128, 256>}, {transform_indices = @transform_11, window_bounds = array<i64: 1, 1, 256>}, {transform_indices = @transform_12, window_bounds = array<i64: 1, 256, 128>}, {transform_indices = @transform_13, window_bounds = array<i64: 1, 1, 128>}, {transform_indices = @transform_14, window_bounds = array<i64: 32, 128>}]} {
    %c0_i32 = arith.constant 0 : i32
    %0 = arith.cmpi eq, %arg1, %c0_i32 : i32
    %1 = arith.extui %0 : i1 to i32
    %c0_i32_0 = arith.constant 0 : i32
    %2 = arith.cmpi ne, %1, %c0_i32_0 : i32
    scf.if %2 {
      %c0_108 = arith.constant 0 : index
      %c0_109 = arith.constant 0 : index
      %270 = vector.load %arg2[%c0_108, %c0_109] : memref<32x128xf32, #tpu.memory_space<vmem>>, vector<32x128xf32>
      %c0_110 = arith.constant 0 : index
      %c0_111 = arith.constant 0 : index
      %271 = vector.load %arg16[%c0_110, %c0_111] : memref<32x128xf32, #tpu.memory_space<vmem>>, vector<32x128xf32>
      tpu.vector_store %arg16[%c0_110, %c0_111], %270 {strides = array<i32>} : memref<32x128xf32, #tpu.memory_space<vmem>>, vector<32x128xf32>,
    } else {
    }
    %c0 = arith.constant 0 : index
    %c0_1 = arith.constant 0 : index
    %3 = vector.load %arg16[%c0, %c0_1] : memref<32x128xf32, #tpu.memory_space<vmem>>, vector<32x128xf32>
    %c0_2 = arith.constant 0 : index
    %c0_3 = arith.constant 0 : index
    %c0_4 = arith.constant 0 : index
    %4 = vector.load %arg4[%c0_2, %c0_3, %c0_4] : memref<1x1x128xf32, #tpu.memory_space<vmem>>, vector<1x1x128xf32>
    %5 = vector.shape_cast %4 : vector<1x1x128xf32> to vector<128xf32>
    %c0_5 = arith.constant 0 : index
    %c0_6 = arith.constant 0 : index
    %c0_7 = arith.constant 0 : index
    %6 = vector.load %arg5[%c0_5, %c0_6, %c0_7] : memref<1x1x128xf32, #tpu.memory_space<vmem>>, vector<1x1x128xf32>
    %7 = vector.shape_cast %6 : vector<1x1x128xf32> to vector<128xf32>
    %cst = arith.constant dense<0.000000e+00> : vector<32xf32>
    %8 = vector.multi_reduction <add>, %3, %cst [1] : vector<32x128xf32> to vector<32xf32>
    %9 = vector.shape_cast %8 : vector<32xf32> to vector<32x1xf32>
    %cst_8 = arith.constant 1.280000e+02 : f32
    %10 = vector.broadcast %cst_8 : f32 to vector<32x1xf32>
    %11 = arith.divf %9, %10 : vector<32x1xf32>
    %12 = vector.broadcast %11 : vector<32x1xf32> to vector<32x128xf32>
    %13 = arith.subf %3, %12 : vector<32x128xf32>
    %14 = arith.mulf %13, %13 : vector<32x128xf32>
    %cst_9 = arith.constant dense<0.000000e+00> : vector<32xf32>
    %15 = vector.multi_reduction <add>, %14, %cst_9 [1] : vector<32x128xf32> to vector<32xf32>
    %16 = vector.shape_cast %15 : vector<32xf32> to vector<32x1xf32>
    %cst_10 = arith.constant 1.280000e+02 : f32
    %17 = vector.broadcast %cst_10 : f32 to vector<32x1xf32>
    %18 = arith.divf %16, %17 : vector<32x1xf32>
    %19 = vector.broadcast %11 : vector<32x1xf32> to vector<32x128xf32>
    %20 = arith.subf %3, %19 : vector<32x128xf32>
    %cst_11 = arith.constant 9.99999997E-7 : f32
    %21 = vector.broadcast %cst_11 : f32 to vector<32x1xf32>
    %22 = arith.addf %18, %21 : vector<32x1xf32>
    %23 = math.rsqrt %22 : vector<32x1xf32>
    %24 = vector.broadcast %23 : vector<32x1xf32> to vector<32x128xf32>
    %25 = arith.mulf %20, %24 : vector<32x128xf32>
    %26 = vector.shape_cast %5 : vector<128xf32> to vector<1x128xf32>
    %27 = vector.broadcast %26 : vector<1x128xf32> to vector<32x128xf32>
    %28 = arith.mulf %25, %27 : vector<32x128xf32>
    %29 = vector.shape_cast %7 : vector<128xf32> to vector<1x128xf32>
    %30 = vector.broadcast %29 : vector<1x128xf32> to vector<32x128xf32>
    %31 = arith.addf %28, %30 : vector<32x128xf32>
    %32 = arith.truncf %31 : vector<32x128xf32> to vector<32x128xbf16>
    %c0_12 = arith.constant 0 : index
    %c0_13 = arith.constant 0 : index
    %c0_14 = arith.constant 0 : index
    %33 = vector.load %arg6[%c0_12, %c0_13, %c0_14] : memref<1x128x384xbf16, #tpu.memory_space<vmem>>, vector<1x128x384xbf16>
    %34 = vector.shape_cast %33 : vector<1x128x384xbf16> to vector<128x384xbf16>
    %cst_15 = arith.constant dense<0.000000e+00> : vector<32x384xf32>
    %35 = tpu.matmul %32, %34, %cst_15 {dimension_numbers = #tpu.dot_dimension_numbers<[1], [0], [0], [1], [0, 0, 1, 1], [], []>} : vector<32x128xbf16>, vector<128x384xbf16>, vector<32x384xf32> -> vector<32x384xf32>
    %c0_16 = arith.constant 0 : index
    %c0_17 = arith.constant 0 : index
    %c0_18 = arith.constant 0 : index
    %36 = vector.load %arg7[%c0_16, %c0_17, %c0_18] : memref<1x1x384xf32, #tpu.memory_space<vmem>>, vector<1x1x384xf32>
    %37 = vector.shape_cast %36 : vector<1x1x384xf32> to vector<1x384xf32>
    %38 = vector.broadcast %37 : vector<1x384xf32> to vector<32x384xf32>
    %39 = arith.addf %35, %38 : vector<32x384xf32>
    %40 = vector.extract_strided_slice %39 {offsets = [0, 0], sizes = [32, 128], strides = [1, 1]} : vector<32x384xf32> to vector<32x128xf32>
    %41 = arith.truncf %40 : vector<32x128xf32> to vector<32x128xbf16>
    %42 = vector.extract_strided_slice %39 {offsets = [0, 128], sizes = [32, 128], strides = [1, 1]} : vector<32x384xf32> to vector<32x128xf32>
    %43 = arith.truncf %42 : vector<32x128xf32> to vector<32x128xbf16>
    %44 = vector.extract_strided_slice %39 {offsets = [0, 256], sizes = [32, 128], strides = [1, 1]} : vector<32x384xf32> to vector<32x128xf32>
    %45 = arith.truncf %44 : vector<32x128xf32> to vector<32x128xbf16>
    %c0_19 = arith.constant 0 : index
    %c0_20 = arith.constant 0 : index
    %c0_21 = arith.constant 0 : index
    %46 = vector.load %arg3[%c0_19, %c0_20, %c0_21] : memref<2x16x16xf32, #tpu.memory_space<vmem>>, vector<1x16x16xf32>
    %47 = vector.shape_cast %46 : vector<1x16x16xf32> to vector<16x16xf32>
    %48 = vector.extract_strided_slice %41 {offsets = [0, 0], sizes = [16, 32], strides = [1, 1]} : vector<32x128xbf16> to vector<16x32xbf16>
    %49 = vector.extract_strided_slice %43 {offsets = [0, 0], sizes = [16, 32], strides = [1, 1]} : vector<32x128xbf16> to vector<16x32xbf16>
    %cst_22 = arith.constant dense<0.000000e+00> : vector<16x16xf32>
    %50 = tpu.matmul %48, %49, %cst_22 {dimension_numbers = #tpu.dot_dimension_numbers<[1], [1], [0], [0], [0, 0, 1, 0], [], []>} : vector<16x32xbf16>, vector<16x32xbf16>, vector<16x16xf32> -> vector<16x16xf32>
    %51 = arith.addf %50, %47 : vector<16x16xf32>
    %cst_23 = arith.constant dense<0xFF800000> : vector<16xf32>
    %52 = vector.multi_reduction <maximumf>, %51, %cst_23 [1] : vector<16x16xf32> to vector<16xf32>
    %53 = vector.shape_cast %52 : vector<16xf32> to vector<16x1xf32>
    %54 = vector.broadcast %53 : vector<16x1xf32> to vector<16x16xf32>
    %55 = arith.subf %51, %54 : vector<16x16xf32>
    %56 = math.exp %55 : vector<16x16xf32>
    %cst_24 = arith.constant dense<0.000000e+00> : vector<16xf32>
    %57 = vector.multi_reduction <add>, %56, %cst_24 [1] : vector<16x16xf32> to vector<16xf32>
    %58 = vector.shape_cast %57 : vector<16xf32> to vector<16x1xf32>
    %59 = tpu.reciprocal %58 {approx = true} : vector<16x1xf32> -> vector<16x1xf32>
    %60 = vector.broadcast %59 : vector<16x1xf32> to vector<16x16xf32>
    %61 = arith.mulf %56, %60 : vector<16x16xf32>
    %62 = arith.truncf %61 : vector<16x16xf32> to vector<16x16xbf16>
    %63 = vector.extract_strided_slice %45 {offsets = [0, 0], sizes = [16, 32], strides = [1, 1]} : vector<32x128xbf16> to vector<16x32xbf16>
    %cst_25 = arith.constant dense<0.000000e+00> : vector<16x32xf32>
    %64 = tpu.matmul %62, %63, %cst_25 {dimension_numbers = #tpu.dot_dimension_numbers<[1], [0], [0], [1], [0, 0, 1, 1], [], []>} : vector<16x16xbf16>, vector<16x32xbf16>, vector<16x32xf32> -> vector<16x32xf32>
    %65 = arith.truncf %64 : vector<16x32xf32> to vector<16x32xbf16>
    %c0_26 = arith.constant 0 : index
    %c0_27 = arith.constant 0 : index
    %66 = vector.load %arg17[%c0_26, %c0_27] : memref<32x128xbf16, #tpu.memory_space<vmem>>, vector<16x32xbf16>
    tpu.vector_store %arg17[%c0_26, %c0_27], %65 {strides = array<i32>} : memref<32x128xbf16, #tpu.memory_space<vmem>>, vector<16x32xbf16>,
    %67 = vector.extract_strided_slice %41 {offsets = [0, 32], sizes = [16, 32], strides = [1, 1]} : vector<32x128xbf16> to vector<16x32xbf16>
    %68 = vector.extract_strided_slice %43 {offsets = [0, 32], sizes = [16, 32], strides = [1, 1]} : vector<32x128xbf16> to vector<16x32xbf16>
    %cst_28 = arith.constant dense<0.000000e+00> : vector<16x16xf32>
    %69 = tpu.matmul %67, %68, %cst_28 {dimension_numbers = #tpu.dot_dimension_numbers<[1], [1], [0], [0], [0, 0, 1, 0], [], []>} : vector<16x32xbf16>, vector<16x32xbf16>, vector<16x16xf32> -> vector<16x16xf32>
    %70 = arith.addf %69, %47 : vector<16x16xf32>
    %cst_29 = arith.constant dense<0xFF800000> : vector<16xf32>
    %71 = vector.multi_reduction <maximumf>, %70, %cst_29 [1] : vector<16x16xf32> to vector<16xf32>
    %72 = vector.shape_cast %71 : vector<16xf32> to vector<16x1xf32>
    %73 = vector.broadcast %72 : vector<16x1xf32> to vector<16x16xf32>
    %74 = arith.subf %70, %73 : vector<16x16xf32>
    %75 = math.exp %74 : vector<16x16xf32>
    %cst_30 = arith.constant dense<0.000000e+00> : vector<16xf32>
    %76 = vector.multi_reduction <add>, %75, %cst_30 [1] : vector<16x16xf32> to vector<16xf32>
    %77 = vector.shape_cast %76 : vector<16xf32> to vector<16x1xf32>
    %78 = tpu.reciprocal %77 {approx = true} : vector<16x1xf32> -> vector<16x1xf32>
    %79 = vector.broadcast %78 : vector<16x1xf32> to vector<16x16xf32>
    %80 = arith.mulf %75, %79 : vector<16x16xf32>
    %81 = arith.truncf %80 : vector<16x16xf32> to vector<16x16xbf16>
    %82 = vector.extract_strided_slice %45 {offsets = [0, 32], sizes = [16, 32], strides = [1, 1]} : vector<32x128xbf16> to vector<16x32xbf16>
    %cst_31 = arith.constant dense<0.000000e+00> : vector<16x32xf32>
    %83 = tpu.matmul %81, %82, %cst_31 {dimension_numbers = #tpu.dot_dimension_numbers<[1], [0], [0], [1], [0, 0, 1, 1], [], []>} : vector<16x16xbf16>, vector<16x32xbf16>, vector<16x32xf32> -> vector<16x32xf32>
    %84 = arith.truncf %83 : vector<16x32xf32> to vector<16x32xbf16>
    %c0_32 = arith.constant 0 : index
    %c32 = arith.constant 32 : index
    %85 = vector.load %arg17[%c0_32, %c32] : memref<32x128xbf16, #tpu.memory_space<vmem>>, vector<16x32xbf16>
    tpu.vector_store %arg17[%c0_32, %c32], %84 {strides = array<i32>} : memref<32x128xbf16, #tpu.memory_space<vmem>>, vector<16x32xbf16>,
    %86 = vector.extract_strided_slice %41 {offsets = [0, 64], sizes = [16, 32], strides = [1, 1]} : vector<32x128xbf16> to vector<16x32xbf16>
    %87 = vector.extract_strided_slice %43 {offsets = [0, 64], sizes = [16, 32], strides = [1, 1]} : vector<32x128xbf16> to vector<16x32xbf16>
    %cst_33 = arith.constant dense<0.000000e+00> : vector<16x16xf32>
    %88 = tpu.matmul %86, %87, %cst_33 {dimension_numbers = #tpu.dot_dimension_numbers<[1], [1], [0], [0], [0, 0, 1, 0], [], []>} : vector<16x32xbf16>, vector<16x32xbf16>, vector<16x16xf32> -> vector<16x16xf32>
    %89 = arith.addf %88, %47 : vector<16x16xf32>
    %cst_34 = arith.constant dense<0xFF800000> : vector<16xf32>
    %90 = vector.multi_reduction <maximumf>, %89, %cst_34 [1] : vector<16x16xf32> to vector<16xf32>
    %91 = vector.shape_cast %90 : vector<16xf32> to vector<16x1xf32>
    %92 = vector.broadcast %91 : vector<16x1xf32> to vector<16x16xf32>
    %93 = arith.subf %89, %92 : vector<16x16xf32>
    %94 = math.exp %93 : vector<16x16xf32>
    %cst_35 = arith.constant dense<0.000000e+00> : vector<16xf32>
    %95 = vector.multi_reduction <add>, %94, %cst_35 [1] : vector<16x16xf32> to vector<16xf32>
    %96 = vector.shape_cast %95 : vector<16xf32> to vector<16x1xf32>
    %97 = tpu.reciprocal %96 {approx = true} : vector<16x1xf32> -> vector<16x1xf32>
    %98 = vector.broadcast %97 : vector<16x1xf32> to vector<16x16xf32>
    %99 = arith.mulf %94, %98 : vector<16x16xf32>
    %100 = arith.truncf %99 : vector<16x16xf32> to vector<16x16xbf16>
    %101 = vector.extract_strided_slice %45 {offsets = [0, 64], sizes = [16, 32], strides = [1, 1]} : vector<32x128xbf16> to vector<16x32xbf16>
    %cst_36 = arith.constant dense<0.000000e+00> : vector<16x32xf32>
    %102 = tpu.matmul %100, %101, %cst_36 {dimension_numbers = #tpu.dot_dimension_numbers<[1], [0], [0], [1], [0, 0, 1, 1], [], []>} : vector<16x16xbf16>, vector<16x32xbf16>, vector<16x32xf32> -> vector<16x32xf32>
    %103 = arith.truncf %102 : vector<16x32xf32> to vector<16x32xbf16>
    %c0_37 = arith.constant 0 : index
    %c64 = arith.constant 64 : index
    %104 = vector.load %arg17[%c0_37, %c64] : memref<32x128xbf16, #tpu.memory_space<vmem>>, vector<16x32xbf16>
    tpu.vector_store %arg17[%c0_37, %c64], %103 {strides = array<i32>} : memref<32x128xbf16, #tpu.memory_space<vmem>>, vector<16x32xbf16>,
    %105 = vector.extract_strided_slice %41 {offsets = [0, 96], sizes = [16, 32], strides = [1, 1]} : vector<32x128xbf16> to vector<16x32xbf16>
    %106 = vector.extract_strided_slice %43 {offsets = [0, 96], sizes = [16, 32], strides = [1, 1]} : vector<32x128xbf16> to vector<16x32xbf16>
    %cst_38 = arith.constant dense<0.000000e+00> : vector<16x16xf32>
    %107 = tpu.matmul %105, %106, %cst_38 {dimension_numbers = #tpu.dot_dimension_numbers<[1], [1], [0], [0], [0, 0, 1, 0], [], []>} : vector<16x32xbf16>, vector<16x32xbf16>, vector<16x16xf32> -> vector<16x16xf32>
    %108 = arith.addf %107, %47 : vector<16x16xf32>
    %cst_39 = arith.constant dense<0xFF800000> : vector<16xf32>
    %109 = vector.multi_reduction <maximumf>, %108, %cst_39 [1] : vector<16x16xf32> to vector<16xf32>
    %110 = vector.shape_cast %109 : vector<16xf32> to vector<16x1xf32>
    %111 = vector.broadcast %110 : vector<16x1xf32> to vector<16x16xf32>
    %112 = arith.subf %108, %111 : vector<16x16xf32>
    %113 = math.exp %112 : vector<16x16xf32>
    %cst_40 = arith.constant dense<0.000000e+00> : vector<16xf32>
    %114 = vector.multi_reduction <add>, %113, %cst_40 [1] : vector<16x16xf32> to vector<16xf32>
    %115 = vector.shape_cast %114 : vector<16xf32> to vector<16x1xf32>
    %116 = tpu.reciprocal %115 {approx = true} : vector<16x1xf32> -> vector<16x1xf32>
    %117 = vector.broadcast %116 : vector<16x1xf32> to vector<16x16xf32>
    %118 = arith.mulf %113, %117 : vector<16x16xf32>
    %119 = arith.truncf %118 : vector<16x16xf32> to vector<16x16xbf16>
    %120 = vector.extract_strided_slice %45 {offsets = [0, 96], sizes = [16, 32], strides = [1, 1]} : vector<32x128xbf16> to vector<16x32xbf16>
    %cst_41 = arith.constant dense<0.000000e+00> : vector<16x32xf32>
    %121 = tpu.matmul %119, %120, %cst_41 {dimension_numbers = #tpu.dot_dimension_numbers<[1], [0], [0], [1], [0, 0, 1, 1], [], []>} : vector<16x16xbf16>, vector<16x32xbf16>, vector<16x32xf32> -> vector<16x32xf32>
    %122 = arith.truncf %121 : vector<16x32xf32> to vector<16x32xbf16>
    %c0_42 = arith.constant 0 : index
    %c96 = arith.constant 96 : index
    %123 = vector.load %arg17[%c0_42, %c96] : memref<32x128xbf16, #tpu.memory_space<vmem>>, vector<16x32xbf16>
    tpu.vector_store %arg17[%c0_42, %c96], %122 {strides = array<i32>} : memref<32x128xbf16, #tpu.memory_space<vmem>>, vector<16x32xbf16>,
    %c1 = arith.constant 1 : index
    %c0_43 = arith.constant 0 : index
    %c0_44 = arith.constant 0 : index
    %124 = vector.load %arg3[%c1, %c0_43, %c0_44] : memref<2x16x16xf32, #tpu.memory_space<vmem>>, vector<1x16x16xf32>
    %125 = vector.shape_cast %124 : vector<1x16x16xf32> to vector<16x16xf32>
    %126 = vector.extract_strided_slice %41 {offsets = [16, 0], sizes = [16, 32], strides = [1, 1]} : vector<32x128xbf16> to vector<16x32xbf16>
    %127 = vector.extract_strided_slice %43 {offsets = [16, 0], sizes = [16, 32], strides = [1, 1]} : vector<32x128xbf16> to vector<16x32xbf16>
    %cst_45 = arith.constant dense<0.000000e+00> : vector<16x16xf32>
    %128 = tpu.matmul %126, %127, %cst_45 {dimension_numbers = #tpu.dot_dimension_numbers<[1], [1], [0], [0], [0, 0, 1, 0], [], []>} : vector<16x32xbf16>, vector<16x32xbf16>, vector<16x16xf32> -> vector<16x16xf32>
    %129 = arith.addf %128, %125 : vector<16x16xf32>
    %cst_46 = arith.constant dense<0xFF800000> : vector<16xf32>
    %130 = vector.multi_reduction <maximumf>, %129, %cst_46 [1] : vector<16x16xf32> to vector<16xf32>
    %131 = vector.shape_cast %130 : vector<16xf32> to vector<16x1xf32>
    %132 = vector.broadcast %131 : vector<16x1xf32> to vector<16x16xf32>
    %133 = arith.subf %129, %132 : vector<16x16xf32>
    %134 = math.exp %133 : vector<16x16xf32>
    %cst_47 = arith.constant dense<0.000000e+00> : vector<16xf32>
    %135 = vector.multi_reduction <add>, %134, %cst_47 [1] : vector<16x16xf32> to vector<16xf32>
    %136 = vector.shape_cast %135 : vector<16xf32> to vector<16x1xf32>
    %137 = tpu.reciprocal %136 {approx = true} : vector<16x1xf32> -> vector<16x1xf32>
    %138 = vector.broadcast %137 : vector<16x1xf32> to vector<16x16xf32>
    %139 = arith.mulf %134, %138 : vector<16x16xf32>
    %140 = arith.truncf %139 : vector<16x16xf32> to vector<16x16xbf16>
    %141 = vector.extract_strided_slice %45 {offsets = [16, 0], sizes = [16, 32], strides = [1, 1]} : vector<32x128xbf16> to vector<16x32xbf16>
    %cst_48 = arith.constant dense<0.000000e+00> : vector<16x32xf32>
    %142 = tpu.matmul %140, %141, %cst_48 {dimension_numbers = #tpu.dot_dimension_numbers<[1], [0], [0], [1], [0, 0, 1, 1], [], []>} : vector<16x16xbf16>, vector<16x32xbf16>, vector<16x32xf32> -> vector<16x32xf32>
    %143 = arith.truncf %142 : vector<16x32xf32> to vector<16x32xbf16>
    %c16 = arith.constant 16 : index
    %c0_49 = arith.constant 0 : index
    %144 = vector.load %arg17[%c16, %c0_49] : memref<32x128xbf16, #tpu.memory_space<vmem>>, vector<16x32xbf16>
    tpu.vector_store %arg17[%c16, %c0_49], %143 {strides = array<i32>} : memref<32x128xbf16, #tpu.memory_space<vmem>>, vector<16x32xbf16>,
    %145 = vector.extract_strided_slice %41 {offsets = [16, 32], sizes = [16, 32], strides = [1, 1]} : vector<32x128xbf16> to vector<16x32xbf16>
    %146 = vector.extract_strided_slice %43 {offsets = [16, 32], sizes = [16, 32], strides = [1, 1]} : vector<32x128xbf16> to vector<16x32xbf16>
    %cst_50 = arith.constant dense<0.000000e+00> : vector<16x16xf32>
    %147 = tpu.matmul %145, %146, %cst_50 {dimension_numbers = #tpu.dot_dimension_numbers<[1], [1], [0], [0], [0, 0, 1, 0], [], []>} : vector<16x32xbf16>, vector<16x32xbf16>, vector<16x16xf32> -> vector<16x16xf32>
    %148 = arith.addf %147, %125 : vector<16x16xf32>
    %cst_51 = arith.constant dense<0xFF800000> : vector<16xf32>
    %149 = vector.multi_reduction <maximumf>, %148, %cst_51 [1] : vector<16x16xf32> to vector<16xf32>
    %150 = vector.shape_cast %149 : vector<16xf32> to vector<16x1xf32>
    %151 = vector.broadcast %150 : vector<16x1xf32> to vector<16x16xf32>
    %152 = arith.subf %148, %151 : vector<16x16xf32>
    %153 = math.exp %152 : vector<16x16xf32>
    %cst_52 = arith.constant dense<0.000000e+00> : vector<16xf32>
    %154 = vector.multi_reduction <add>, %153, %cst_52 [1] : vector<16x16xf32> to vector<16xf32>
    %155 = vector.shape_cast %154 : vector<16xf32> to vector<16x1xf32>
    %156 = tpu.reciprocal %155 {approx = true} : vector<16x1xf32> -> vector<16x1xf32>
    %157 = vector.broadcast %156 : vector<16x1xf32> to vector<16x16xf32>
    %158 = arith.mulf %153, %157 : vector<16x16xf32>
    %159 = arith.truncf %158 : vector<16x16xf32> to vector<16x16xbf16>
    %160 = vector.extract_strided_slice %45 {offsets = [16, 32], sizes = [16, 32], strides = [1, 1]} : vector<32x128xbf16> to vector<16x32xbf16>
    %cst_53 = arith.constant dense<0.000000e+00> : vector<16x32xf32>
    %161 = tpu.matmul %159, %160, %cst_53 {dimension_numbers = #tpu.dot_dimension_numbers<[1], [0], [0], [1], [0, 0, 1, 1], [], []>} : vector<16x16xbf16>, vector<16x32xbf16>, vector<16x32xf32> -> vector<16x32xf32>
    %162 = arith.truncf %161 : vector<16x32xf32> to vector<16x32xbf16>
    %c16_54 = arith.constant 16 : index
    %c32_55 = arith.constant 32 : index
    %163 = vector.load %arg17[%c16_54, %c32_55] : memref<32x128xbf16, #tpu.memory_space<vmem>>, vector<16x32xbf16>
    tpu.vector_store %arg17[%c16_54, %c32_55], %162 {strides = array<i32>} : memref<32x128xbf16, #tpu.memory_space<vmem>>, vector<16x32xbf16>,
    %164 = vector.extract_strided_slice %41 {offsets = [16, 64], sizes = [16, 32], strides = [1, 1]} : vector<32x128xbf16> to vector<16x32xbf16>
    %165 = vector.extract_strided_slice %43 {offsets = [16, 64], sizes = [16, 32], strides = [1, 1]} : vector<32x128xbf16> to vector<16x32xbf16>
    %cst_56 = arith.constant dense<0.000000e+00> : vector<16x16xf32>
    %166 = tpu.matmul %164, %165, %cst_56 {dimension_numbers = #tpu.dot_dimension_numbers<[1], [1], [0], [0], [0, 0, 1, 0], [], []>} : vector<16x32xbf16>, vector<16x32xbf16>, vector<16x16xf32> -> vector<16x16xf32>
    %167 = arith.addf %166, %125 : vector<16x16xf32>
    %cst_57 = arith.constant dense<0xFF800000> : vector<16xf32>
    %168 = vector.multi_reduction <maximumf>, %167, %cst_57 [1] : vector<16x16xf32> to vector<16xf32>
    %169 = vector.shape_cast %168 : vector<16xf32> to vector<16x1xf32>
    %170 = vector.broadcast %169 : vector<16x1xf32> to vector<16x16xf32>
    %171 = arith.subf %167, %170 : vector<16x16xf32>
    %172 = math.exp %171 : vector<16x16xf32>
    %cst_58 = arith.constant dense<0.000000e+00> : vector<16xf32>
    %173 = vector.multi_reduction <add>, %172, %cst_58 [1] : vector<16x16xf32> to vector<16xf32>
    %174 = vector.shape_cast %173 : vector<16xf32> to vector<16x1xf32>
    %175 = tpu.reciprocal %174 {approx = true} : vector<16x1xf32> -> vector<16x1xf32>
    %176 = vector.broadcast %175 : vector<16x1xf32> to vector<16x16xf32>
    %177 = arith.mulf %172, %176 : vector<16x16xf32>
    %178 = arith.truncf %177 : vector<16x16xf32> to vector<16x16xbf16>
    %179 = vector.extract_strided_slice %45 {offsets = [16, 64], sizes = [16, 32], strides = [1, 1]} : vector<32x128xbf16> to vector<16x32xbf16>
    %cst_59 = arith.constant dense<0.000000e+00> : vector<16x32xf32>
    %180 = tpu.matmul %178, %179, %cst_59 {dimension_numbers = #tpu.dot_dimension_numbers<[1], [0], [0], [1], [0, 0, 1, 1], [], []>} : vector<16x16xbf16>, vector<16x32xbf16>, vector<16x32xf32> -> vector<16x32xf32>
    %181 = arith.truncf %180 : vector<16x32xf32> to vector<16x32xbf16>
    %c16_60 = arith.constant 16 : index
    %c64_61 = arith.constant 64 : index
    %182 = vector.load %arg17[%c16_60, %c64_61] : memref<32x128xbf16, #tpu.memory_space<vmem>>, vector<16x32xbf16>
    tpu.vector_store %arg17[%c16_60, %c64_61], %181 {strides = array<i32>} : memref<32x128xbf16, #tpu.memory_space<vmem>>, vector<16x32xbf16>,
    %183 = vector.extract_strided_slice %41 {offsets = [16, 96], sizes = [16, 32], strides = [1, 1]} : vector<32x128xbf16> to vector<16x32xbf16>
    %184 = vector.extract_strided_slice %43 {offsets = [16, 96], sizes = [16, 32], strides = [1, 1]} : vector<32x128xbf16> to vector<16x32xbf16>
    %cst_62 = arith.constant dense<0.000000e+00> : vector<16x16xf32>
    %185 = tpu.matmul %183, %184, %cst_62 {dimension_numbers = #tpu.dot_dimension_numbers<[1], [1], [0], [0], [0, 0, 1, 0], [], []>} : vector<16x32xbf16>, vector<16x32xbf16>, vector<16x16xf32> -> vector<16x16xf32>
    %186 = arith.addf %185, %125 : vector<16x16xf32>
    %cst_63 = arith.constant dense<0xFF800000> : vector<16xf32>
    %187 = vector.multi_reduction <maximumf>, %186, %cst_63 [1] : vector<16x16xf32> to vector<16xf32>
    %188 = vector.shape_cast %187 : vector<16xf32> to vector<16x1xf32>
    %189 = vector.broadcast %188 : vector<16x1xf32> to vector<16x16xf32>
    %190 = arith.subf %186, %189 : vector<16x16xf32>
    %191 = math.exp %190 : vector<16x16xf32>
    %cst_64 = arith.constant dense<0.000000e+00> : vector<16xf32>
    %192 = vector.multi_reduction <add>, %191, %cst_64 [1] : vector<16x16xf32> to vector<16xf32>
    %193 = vector.shape_cast %192 : vector<16xf32> to vector<16x1xf32>
    %194 = tpu.reciprocal %193 {approx = true} : vector<16x1xf32> -> vector<16x1xf32>
    %195 = vector.broadcast %194 : vector<16x1xf32> to vector<16x16xf32>
    %196 = arith.mulf %191, %195 : vector<16x16xf32>
    %197 = arith.truncf %196 : vector<16x16xf32> to vector<16x16xbf16>
    %198 = vector.extract_strided_slice %45 {offsets = [16, 96], sizes = [16, 32], strides = [1, 1]} : vector<32x128xbf16> to vector<16x32xbf16>
    %cst_65 = arith.constant dense<0.000000e+00> : vector<16x32xf32>
    %199 = tpu.matmul %197, %198, %cst_65 {dimension_numbers = #tpu.dot_dimension_numbers<[1], [0], [0], [1], [0, 0, 1, 1], [], []>} : vector<16x16xbf16>, vector<16x32xbf16>, vector<16x32xf32> -> vector<16x32xf32>
    %200 = arith.truncf %199 : vector<16x32xf32> to vector<16x32xbf16>
    %c16_66 = arith.constant 16 : index
    %c96_67 = arith.constant 96 : index
    %201 = vector.load %arg17[%c16_66, %c96_67] : memref<32x128xbf16, #tpu.memory_space<vmem>>, vector<16x32xbf16>
    tpu.vector_store %arg17[%c16_66, %c96_67], %200 {strides = array<i32>} : memref<32x128xbf16, #tpu.memory_space<vmem>>, vector<16x32xbf16>,
    %c0_68 = arith.constant 0 : index
    %c0_69 = arith.constant 0 : index
    %202 = vector.load %arg17[%c0_68, %c0_69] : memref<32x128xbf16, #tpu.memory_space<vmem>>, vector<32x128xbf16>
    %c0_70 = arith.constant 0 : index
    %c0_71 = arith.constant 0 : index
    %c0_72 = arith.constant 0 : index
    %203 = vector.load %arg8[%c0_70, %c0_71, %c0_72] : memref<1x128x128xbf16, #tpu.memory_space<vmem>>, vector<1x128x128xbf16>
    %204 = vector.shape_cast %203 : vector<1x128x128xbf16> to vector<128x128xbf16>
    %cst_73 = arith.constant dense<0.000000e+00> : vector<32x128xf32>
    %205 = tpu.matmul %202, %204, %cst_73 {dimension_numbers = #tpu.dot_dimension_numbers<[1], [0], [0], [1], [0, 0, 1, 1], [], []>} : vector<32x128xbf16>, vector<128x128xbf16>, vector<32x128xf32> -> vector<32x128xf32>
    %c0_74 = arith.constant 0 : index
    %c0_75 = arith.constant 0 : index
    %c0_76 = arith.constant 0 : index
    %206 = vector.load %arg9[%c0_74, %c0_75, %c0_76] : memref<1x1x128xf32, #tpu.memory_space<vmem>>, vector<1x1x128xf32>
    %207 = vector.shape_cast %206 : vector<1x1x128xf32> to vector<1x128xf32>
    %208 = vector.broadcast %207 : vector<1x128xf32> to vector<32x128xf32>
    %209 = arith.addf %205, %208 : vector<32x128xf32>
    %210 = arith.addf %3, %209 : vector<32x128xf32>
    %c0_77 = arith.constant 0 : index
    %c0_78 = arith.constant 0 : index
    %c0_79 = arith.constant 0 : index
    %211 = vector.load %arg10[%c0_77, %c0_78, %c0_79] : memref<1x1x128xf32, #tpu.memory_space<vmem>>, vector<1x1x128xf32>
    %212 = vector.shape_cast %211 : vector<1x1x128xf32> to vector<128xf32>
    %c0_80 = arith.constant 0 : index
    %c0_81 = arith.constant 0 : index
    %c0_82 = arith.constant 0 : index
    %213 = vector.load %arg11[%c0_80, %c0_81, %c0_82] : memref<1x1x128xf32, #tpu.memory_space<vmem>>, vector<1x1x128xf32>
    %214 = vector.shape_cast %213 : vector<1x1x128xf32> to vector<128xf32>
    %cst_83 = arith.constant dense<0.000000e+00> : vector<32xf32>
    %215 = vector.multi_reduction <add>, %210, %cst_83 [1] : vector<32x128xf32> to vector<32xf32>
    %216 = vector.shape_cast %215 : vector<32xf32> to vector<32x1xf32>
    %cst_84 = arith.constant 1.280000e+02 : f32
    %217 = vector.broadcast %cst_84 : f32 to vector<32x1xf32>
    %218 = arith.divf %216, %217 : vector<32x1xf32>
    %219 = vector.broadcast %218 : vector<32x1xf32> to vector<32x128xf32>
    %220 = arith.subf %210, %219 : vector<32x128xf32>
    %221 = arith.mulf %220, %220 : vector<32x128xf32>
    %cst_85 = arith.constant dense<0.000000e+00> : vector<32xf32>
    %222 = vector.multi_reduction <add>, %221, %cst_85 [1] : vector<32x128xf32> to vector<32xf32>
    %223 = vector.shape_cast %222 : vector<32xf32> to vector<32x1xf32>
    %cst_86 = arith.constant 1.280000e+02 : f32
    %224 = vector.broadcast %cst_86 : f32 to vector<32x1xf32>
    %225 = arith.divf %223, %224 : vector<32x1xf32>
    %226 = vector.broadcast %218 : vector<32x1xf32> to vector<32x128xf32>
    %227 = arith.subf %210, %226 : vector<32x128xf32>
    %cst_87 = arith.constant 9.99999997E-7 : f32
    %228 = vector.broadcast %cst_87 : f32 to vector<32x1xf32>
    %229 = arith.addf %225, %228 : vector<32x1xf32>
    %230 = math.rsqrt %229 : vector<32x1xf32>
    %231 = vector.broadcast %230 : vector<32x1xf32> to vector<32x128xf32>
    %232 = arith.mulf %227, %231 : vector<32x128xf32>
    %233 = vector.shape_cast %212 : vector<128xf32> to vector<1x128xf32>
    %234 = vector.broadcast %233 : vector<1x128xf32> to vector<32x128xf32>
    %235 = arith.mulf %232, %234 : vector<32x128xf32>
    %236 = vector.shape_cast %214 : vector<128xf32> to vector<1x128xf32>
    %237 = vector.broadcast %236 : vector<1x128xf32> to vector<32x128xf32>
    %238 = arith.addf %235, %237 : vector<32x128xf32>
    %239 = arith.truncf %238 : vector<32x128xf32> to vector<32x128xbf16>
    %c0_88 = arith.constant 0 : index
    %c0_89 = arith.constant 0 : index
    %c0_90 = arith.constant 0 : index
    %240 = vector.load %arg12[%c0_88, %c0_89, %c0_90] : memref<1x128x256xbf16, #tpu.memory_space<vmem>>, vector<1x128x256xbf16>
    %241 = vector.shape_cast %240 : vector<1x128x256xbf16> to vector<128x256xbf16>
    %cst_91 = arith.constant dense<0.000000e+00> : vector<32x256xf32>
    %242 = tpu.matmul %239, %241, %cst_91 {dimension_numbers = #tpu.dot_dimension_numbers<[1], [0], [0], [1], [0, 0, 1, 1], [], []>} : vector<32x128xbf16>, vector<128x256xbf16>, vector<32x256xf32> -> vector<32x256xf32>
    %c0_92 = arith.constant 0 : index
    %c0_93 = arith.constant 0 : index
    %c0_94 = arith.constant 0 : index
    %243 = vector.load %arg13[%c0_92, %c0_93, %c0_94] : memref<1x1x256xf32, #tpu.memory_space<vmem>>, vector<1x1x256xf32>
    %244 = vector.shape_cast %243 : vector<1x1x256xf32> to vector<1x256xf32>
    %245 = vector.broadcast %244 : vector<1x256xf32> to vector<32x256xf32>
    %246 = arith.addf %242, %245 : vector<32x256xf32>
    %cst_95 = arith.constant 5.000000e-01 : f32
    %247 = vector.broadcast %cst_95 : f32 to vector<32x256xf32>
    %248 = arith.mulf %247, %246 : vector<32x256xf32>
    %cst_96 = arith.constant 4.471500e-02 : f32
    %249 = vector.broadcast %cst_96 : f32 to vector<32x256xf32>
    %250 = arith.mulf %249, %246 : vector<32x256xf32>
    %251 = arith.mulf %250, %246 : vector<32x256xf32>
    %252 = arith.mulf %251, %246 : vector<32x256xf32>
    %253 = arith.addf %246, %252 : vector<32x256xf32>
    %cst_97 = arith.constant 0.797884583 : f32
    %254 = vector.broadcast %cst_97 : f32 to vector<32x256xf32>
    %255 = arith.mulf %254, %253 : vector<32x256xf32>
    %256 = math.tanh %255 : vector<32x256xf32>
    %cst_98 = arith.constant 1.000000e+00 : f32
    %257 = vector.broadcast %cst_98 : f32 to vector<32x256xf32>
    %258 = arith.addf %257, %256 : vector<32x256xf32>
    %259 = arith.mulf %248, %258 : vector<32x256xf32>
    %260 = arith.truncf %259 : vector<32x256xf32> to vector<32x256xbf16>
    %c0_99 = arith.constant 0 : index
    %c0_100 = arith.constant 0 : index
    %c0_101 = arith.constant 0 : index
    %261 = vector.load %arg14[%c0_99, %c0_100, %c0_101] : memref<1x256x128xbf16, #tpu.memory_space<vmem>>, vector<1x256x128xbf16>
    %262 = vector.shape_cast %261 : vector<1x256x128xbf16> to vector<256x128xbf16>
    %cst_102 = arith.constant dense<0.000000e+00> : vector<32x128xf32>
    %263 = tpu.matmul %260, %262, %cst_102 {dimension_numbers = #tpu.dot_dimension_numbers<[1], [0], [0], [1], [0, 0, 1, 1], [], []>} : vector<32x256xbf16>, vector<256x128xbf16>, vector<32x128xf32> -> vector<32x128xf32>
    %c0_103 = arith.constant 0 : index
    %c0_104 = arith.constant 0 : index
    %c0_105 = arith.constant 0 : index
    %264 = vector.load %arg15[%c0_103, %c0_104, %c0_105] : memref<1x1x128xf32, #tpu.memory_space<vmem>>, vector<1x1x128xf32>
    %265 = vector.shape_cast %264 : vector<1x1x128xf32> to vector<1x128xf32>
    %266 = vector.broadcast %265 : vector<1x128xf32> to vector<32x128xf32>
    %267 = arith.addf %263, %266 : vector<32x128xf32>
    %268 = arith.addf %210, %267 : vector<32x128xf32>
    %c0_106 = arith.constant 0 : index
    %c0_107 = arith.constant 0 : index
    %269 = vector.load %arg16[%c0_106, %c0_107] : memref<32x128xf32, #tpu.memory_space<vmem>>, vector<32x128xf32>
    tpu.vector_store %arg16[%c0_106, %c0_107], %268 {strides = array<i32>} : memref<32x128xf32, #tpu.memory_space<vmem>>, vector<32x128xf32>,
    return
  }
  func.func @transform_0(%arg0: i32, %arg1: i32) -> (i32, i32) {
    %c0_i32 = arith.constant 0 : i32
    %c0_i32_0 = arith.constant 0 : i32
    return %arg0, %c0_i32 : i32, i32
  }
  func.func @transform_1(%arg0: i32, %arg1: i32) -> (i32, i32, i32) {
    %c0_i32 = arith.constant 0 : i32
    %c0_i32_0 = arith.constant 0 : i32
    %c0_i32_1 = arith.constant 0 : i32
    return %arg0, %c0_i32, %c0_i32_0 : i32, i32, i32
  }
  func.func @transform_2(%arg0: i32, %arg1: i32) -> (i32, i32, i32) {
    %c0_i32 = arith.constant 0 : i32
    %c0_i32_0 = arith.constant 0 : i32
    %c0_i32_1 = arith.constant 0 : i32
    return %arg1, %c0_i32, %c0_i32_0 : i32, i32, i32
  }
  func.func @transform_3(%arg0: i32, %arg1: i32) -> (i32, i32, i32) {
    %c0_i32 = arith.constant 0 : i32
    %c0_i32_0 = arith.constant 0 : i32
    %c0_i32_1 = arith.constant 0 : i32
    return %arg1, %c0_i32, %c0_i32_0 : i32, i32, i32
  }
  func.func @transform_4(%arg0: i32, %arg1: i32) -> (i32, i32, i32) {
    %c0_i32 = arith.constant 0 : i32
    %c0_i32_0 = arith.constant 0 : i32
    %c0_i32_1 = arith.constant 0 : i32
    return %arg1, %c0_i32, %c0_i32_0 : i32, i32, i32
  }
  func.func @transform_5(%arg0: i32, %arg1: i32) -> (i32, i32, i32) {
    %c0_i32 = arith.constant 0 : i32
    %c0_i32_0 = arith.constant 0 : i32
    %c0_i32_1 = arith.constant 0 : i32
    return %arg1, %c0_i32, %c0_i32_0 : i32, i32, i32
  }
  func.func @transform_6(%arg0: i32, %arg1: i32) -> (i32, i32, i32) {
    %c0_i32 = arith.constant 0 : i32
    %c0_i32_0 = arith.constant 0 : i32
    %c0_i32_1 = arith.constant 0 : i32
    return %arg1, %c0_i32, %c0_i32_0 : i32, i32, i32
  }
  func.func @transform_7(%arg0: i32, %arg1: i32) -> (i32, i32, i32) {
    %c0_i32 = arith.constant 0 : i32
    %c0_i32_0 = arith.constant 0 : i32
    %c0_i32_1 = arith.constant 0 : i32
    return %arg1, %c0_i32, %c0_i32_0 : i32, i32, i32
  }
  func.func @transform_8(%arg0: i32, %arg1: i32) -> (i32, i32, i32) {
    %c0_i32 = arith.constant 0 : i32
    %c0_i32_0 = arith.constant 0 : i32
    %c0_i32_1 = arith.constant 0 : i32
    return %arg1, %c0_i32, %c0_i32_0 : i32, i32, i32
  }
  func.func @transform_9(%arg0: i32, %arg1: i32) -> (i32, i32, i32) {
    %c0_i32 = arith.constant 0 : i32
    %c0_i32_0 = arith.constant 0 : i32
    %c0_i32_1 = arith.constant 0 : i32
    return %arg1, %c0_i32, %c0_i32_0 : i32, i32, i32
  }
  func.func @transform_10(%arg0: i32, %arg1: i32) -> (i32, i32, i32) {
    %c0_i32 = arith.constant 0 : i32
    %c0_i32_0 = arith.constant 0 : i32
    %c0_i32_1 = arith.constant 0 : i32
    return %arg1, %c0_i32, %c0_i32_0 : i32, i32, i32
  }
  func.func @transform_11(%arg0: i32, %arg1: i32) -> (i32, i32, i32) {
    %c0_i32 = arith.constant 0 : i32
    %c0_i32_0 = arith.constant 0 : i32
    %c0_i32_1 = arith.constant 0 : i32
    return %arg1, %c0_i32, %c0_i32_0 : i32, i32, i32
  }
  func.func @transform_12(%arg0: i32, %arg1: i32) -> (i32, i32, i32) {
    %c0_i32 = arith.constant 0 : i32
    %c0_i32_0 = arith.constant 0 : i32
    %c0_i32_1 = arith.constant 0 : i32
    return %arg1, %c0_i32, %c0_i32_0 : i32, i32, i32
  }
  func.func @transform_13(%arg0: i32, %arg1: i32) -> (i32, i32, i32) {
    %c0_i32 = arith.constant 0 : i32
    %c0_i32_0 = arith.constant 0 : i32
    %c0_i32_1 = arith.constant 0 : i32
    return %arg1, %c0_i32, %c0_i32_0 : i32, i32, i32
  }
  func.func @transform_14(%arg0: i32, %arg1: i32) -> (i32, i32) {
    %c0_i32 = arith.constant 0 : i32
    %c0_i32_0 = arith.constant 0 : i32
    return %arg0, %c0_i32 : i32, i32
  }
}

</mosaic_0001>

<bundles_post_ra>
// kernel: tpu_custom_call.1
= control target key start
LH: loop header
LB: loop body
LE: loop exit
PB: predicated region body
PF: predicated region fallthrough
CT: control target
= control target key end

     0   :  { %19 = vsyncpa [#allocation4], 0  ;;  %s3419_s0 = inlined_call_operand.hbm [shape: f32[32,128], index: 0, kind: input, shape index: {}]   ;;  %s3420_s1 = inlined_call_operand.hbm [shape: f32[2,16,16], index: 1, kind: input, shape index: {}]   ;;  %s3421_s2 = inlined_call_operand.vmem [shape: f32[1,1,128], index: 2, kind: input, shape index: {}]   ;;  %s3422_s3 = inlined_call_operand.vmem [shape: f32[1,1,128], index: 3, kind: input, shape index: {}]   ;;  %s3423_s4 = inlined_call_operand.hbm [shape: bf16[1,128,384], index: 4, kind: input, shape index: {}]   ;;  %s3424_s5 = inlined_call_operand.vmem [shape: f32[1,1,384], index: 5, kind: input, shape index: {}]   ;;  %s3425_s6 = inlined_call_operand.hbm [shape: bf16[1,128,128], index: 6, kind: input, shape index: {}]   ;;  %s3426_s7 = inlined_call_operand.vmem [shape: f32[1,1,128], index: 7, kind: input, shape index: {}]   ;;  %s3427_s8 = inlined_call_operand.vmem [shape: f32[1,1,128], index: 8, kind: input, shape index: {}]   ;;  %s3428_s9 = inlined_call_operand.vmem [shape: f32[1,1,128], index: 9, kind: input, shape index: {}]   ;;  %s3429_s10 = inlined_call_operand.hbm [shape: bf16[1,128,256], index: 10, kind: input, shape index: {}]   ;;  %s3430_s11 = inlined_call_operand.vmem [shape: f32[1,1,256], index: 11, kind: input, shape index: {}]   ;;  %s3431_s12 = inlined_call_operand.hbm [shape: bf16[1,256,128], index: 12, kind: input, shape index: {}]   ;;  %s3432_s13 = inlined_call_operand.vmem [shape: f32[1,1,128], index: 13, kind: input, shape index: {}]   ;;  %s3433_s14 = inlined_call_operand.hbm [shape: f32[32,128], index: 14, kind: output, shape index: {}]  }
   0x1   :  { %20 = vsyncpa [#allocation7], 0 }
   0x2   :  { %21 = vsyncpa [#allocation10], 0 }
   0x3   :  { %22 = vsyncpa [#allocation13], 0 }
   0x4   :  { %23 = vsyncpa [#allocation5], 0  ;;  %s2818_s29 = smov [#allocation6]   ;;  %s2819_s15 = smov [#allocation9]  }
   0x5   :  { %s41_s30 = sshll.u32 %s2818_s29, 4  ;;  %s71_s16 = sshll.u32 %s2819_s15, 4  ;;  %s42_s30 = int_to_ptr.vmem [resolvable:$true] %s41_s30  ;;  %s2911_s16 = int_to_ptr.vmem [resolvable:$true] %s71_s16 }
   0x6   :  { %s2654_s19 = scalar_lea.hbm %s3420_s1, 512 }
   0x7   :  { %p2655_p0 = scmp.ne.s32.totalorder %s3420_s1, %s2654_s19  ;;  %p2658_p1 = scmp.lt.u32.totalorder %s2654_s19, %s3420_s1 }
   0x9   :  { %p2660_p2 = pnand %p2658_p1, %p2655_p0 }
   0xb   :  { %2663 = shalt.err (!%p2660_p2)
}
   0xc   :  { %s2664_s24 = scalar_lea.vmem %s42_s30, 512  ;;  %p2669_p4 = scmp.lt.s32.totalorder %s42_s30, %s42_s30 }
   0xd   :  { %p2665_p3 = scmp.ne.s32.totalorder %s42_s30, %s2664_s24  ;;  %p2670_p5 = scmp.lt.s32.totalorder %s2664_s24, %s2664_s24 }
   0xf   :  { %p2671_p6 = por %p2670_p5, %p2669_p4 }
  0x11   :  { %p2672_p7 = pnand %p2671_p6, %p2665_p3 }
  0x13   :  { %2675 = shalt.err (!%p2672_p7)
}
  0x14   :  { %s3434_s25 = smov 128   ;;  %s2821_s26 = smov 8  }
  0x15   :  { %47 = dma.hbm_to_vmem [thread:$0]  %s3420_s1, 512, %s42_s30, [#allocation7], %s3434_s25, %s3434_s25, %s2821_s26  }
  0x16   :  { %s2676_s17 = scalar_lea.hbm %s3425_s6, 1024 }
  0x17   :  { %p2677_p8 = scmp.ne.s32.totalorder %s3425_s6, %s2676_s17  ;;  %p2680_p9 = scmp.lt.u32.totalorder %s2676_s17, %s3425_s6 }
  0x19   :  { %p2682_p10 = pnand %p2680_p9, %p2677_p8 }
  0x1b   :  { %2685 = shalt.err (!%p2682_p10)
}
  0x1c   :  { %s2686_s22 = scalar_lea.vmem %s2911_s16, 1024  ;;  %p2691_p12 = scmp.lt.s32.totalorder %s2911_s16, %s2911_s16 }
  0x1d   :  { %p2687_p11 = scmp.ne.s32.totalorder %s2911_s16, %s2686_s22  ;;  %p2692_p13 = scmp.lt.s32.totalorder %s2686_s22, %s2686_s22 }
  0x1f   :  { %p2693_p0 = por %p2692_p13, %p2691_p12 }
  0x21   :  { %p2694_p1 = pnand %p2693_p0, %p2687_p11 }
  0x23   :  { %2697 = shalt.err (!%p2694_p1)
}
  0x24   :  { %s3436_s1 = smov 64   ;;  %s2823_s30 = smov 4  }
  0x25   :  { %77 = dma.hbm_to_vmem [thread:$0]  %s3425_s6, 1024, %s2911_s16, [#allocation10], %s3436_s1, %s3436_s1, %s2823_s30  }
  0x26   :  { %s2824_s27 = smov [#allocation3]   ;;  %s2825_s29 = smov [#allocation8]  }
  0x27   :  { %s29_s28 = sshll.u32 %s2824_s27, 4  ;;  %s57_s15 = sshll.u32 %s2825_s29, 4  ;;  %s30_s28 = int_to_ptr.vmem [resolvable:$true] %s29_s28  ;;  %s2948_s15 = int_to_ptr.vmem [resolvable:$true] %s57_s15 }
  0x28   :  { %s2698_s19 = scalar_lea.hbm %s3419_s0, 512 }
  0x29   :  { %p2699_p2 = scmp.ne.s32.totalorder %s3419_s0, %s2698_s19  ;;  %p2702_p3 = scmp.lt.u32.totalorder %s2698_s19, %s3419_s0 }
  0x2b   :  { %p2704_p4 = pnand %p2702_p3, %p2699_p2 }
  0x2d   :  { %2707 = shalt.err (!%p2704_p4)
}
  0x2e   :  { %s2708_s6 = scalar_lea.vmem %s30_s28, 512  ;;  %p2713_p6 = scmp.lt.s32.totalorder %s30_s28, %s30_s28 }
  0x2f   :  { %p2709_p5 = scmp.ne.s32.totalorder %s30_s28, %s2708_s6  ;;  %p2714_p7 = scmp.lt.s32.totalorder %s2708_s6, %s2708_s6 }
  0x31   :  { %p2715_p8 = por %p2714_p7, %p2713_p6 }
  0x33   :  { %p2716_p9 = pnand %p2715_p8, %p2709_p5 }
  0x35   :  { %2719 = shalt.err (!%p2716_p9)
}
  0x36   :  { %s3438_s16 = smov 128   ;;  %s2720_s25 = scalar_lea.hbm %s3423_s4, 3072 }
  0x37   :  { %35 = dma.hbm_to_vmem [thread:$0]  %s3419_s0, 512, %s30_s28, [#allocation4], %s3438_s16, %s3438_s16, %s2821_s26  }
  0x38   :  { %p2721_p10 = scmp.ne.s32.totalorder %s3423_s4, %s2720_s25  ;;  %p2724_p11 = scmp.lt.u32.totalorder %s2720_s25, %s3423_s4 }
  0x3a   :  { %p2726_p12 = pnand %p2724_p11, %p2721_p10 }
  0x3c   :  { %2729 = shalt.err (!%p2726_p12)
}
  0x3d   :  { %s2730_s21 = scalar_lea.vmem %s2948_s15, 3072  ;;  %p2735_p0 = scmp.lt.s32.totalorder %s2948_s15, %s2948_s15 }
  0x3e   :  { %p2731_p13 = scmp.ne.s32.totalorder %s2948_s15, %s2730_s21  ;;  %p2736_p1 = scmp.lt.s32.totalorder %s2730_s21, %s2730_s21 }
  0x40   :  { %p2737_p2 = por %p2736_p1, %p2735_p0 }
  0x42   :  { %p2738_p3 = pnand %p2737_p2, %p2731_p13 }
  0x44   :  { %2741 = shalt.err (!%p2738_p3)
}
  0x45   :  { %s2826_s0 = smov 192   ;;  %s2827_s28 = smov 12  }
  0x46   :  { %63 = dma.hbm_to_vmem [thread:$0]  %s3423_s4, 3072, %s2948_s15, [#allocation7], %s2826_s0, %s2826_s0, %s2827_s28  }
  0x47   :  { %s2828_s23 = smov [#allocation11]   ;;  %s2829_s27 = smov [#allocation12]  }
  0x48   :  { %s89_s24 = sshll.u32 %s2828_s23, 4  ;;  %s103_s29 = sshll.u32 %s2829_s27, 4  ;;  %s90_s24 = int_to_ptr.vmem [resolvable:$true] %s89_s24  ;;  %s2982_s29 = int_to_ptr.vmem [resolvable:$true] %s103_s29 }
  0x49   :  { %s2742_s18 = scalar_lea.hbm %s3429_s10, 2048 }
  0x4a   :  { %p2743_p4 = scmp.ne.s32.totalorder %s3429_s10, %s2742_s18  ;;  %p2746_p5 = scmp.lt.u32.totalorder %s2742_s18, %s3429_s10 }
  0x4c   :  { %p2748_p6 = pnand %p2746_p5, %p2743_p4 }
  0x4e   :  { %2751 = shalt.err (!%p2748_p6)
}
  0x4f   :  { %s2752_s4 = scalar_lea.vmem %s90_s24, 2048  ;;  %p2757_p8 = scmp.lt.s32.totalorder %s90_s24, %s90_s24 }
  0x50   :  { %p2753_p7 = scmp.ne.s32.totalorder %s90_s24, %s2752_s4  ;;  %p2758_p9 = scmp.lt.s32.totalorder %s2752_s4, %s2752_s4 }
  0x52   :  { %p2759_p10 = por %p2758_p9, %p2757_p8 }
  0x54   :  { %p2760_p11 = pnand %p2759_p10, %p2753_p7 }
  0x56   :  { %2763 = shalt.err (!%p2760_p11)
}
  0x57   :  { %95 = dma.hbm_to_vmem [thread:$0]  %s3429_s10, 2048, %s90_s24, [#allocation10], %s3438_s16, %s3438_s16, %s2821_s26  }
  0x58   :  { %s2764_s1 = scalar_lea.hbm %s3431_s12, 2048 }
  0x59   :  { %p2765_p12 = scmp.ne.s32.totalorder %s3431_s12, %s2764_s1  ;;  %p2768_p13 = scmp.lt.u32.totalorder %s2764_s1, %s3431_s12 }
  0x5b   :  { %p2770_p0 = pnand %p2768_p13, %p2765_p12 }
  0x5d   :  { %2773 = shalt.err (!%p2770_p0)
}
  0x5e   :  { %s2774_s17 = scalar_lea.vmem %s2982_s29, 2048  ;;  %p2779_p2 = scmp.lt.s32.totalorder %s2982_s29, %s2982_s29 }
  0x5f   :  { %p2775_p1 = scmp.ne.s32.totalorder %s2982_s29, %s2774_s17  ;;  %p2780_p3 = scmp.lt.s32.totalorder %s2774_s17, %s2774_s17 }
  0x61   :  { %p2781_p4 = por %p2780_p3, %p2779_p2 }
  0x63   :  { %p2782_p5 = pnand %p2781_p4, %p2775_p1 }
  0x65   :  { %2785 = shalt.err (!%p2782_p5)
}
  0x66   :  { %s3439_s10 = smov 64  }
  0x67   :  { %109 = dma.hbm_to_vmem [thread:$0]  %s3431_s12, 2048, %s2982_s29, [#allocation13], %s3439_s10, %s3439_s10, %s2823_s30  }
  0x68   :  { %2808 = dma.done.wait [#allocation4], 512  }
  0x69   :  { %2809 = vsyncadd [#allocation4], 4294966784 }
  0x6a   :  { %2810 = dma.done.wait [#allocation7], 3584  }
  0x6b   :  { %2811 = vsyncadd [#allocation7], 4294963712 }
  0x6c   :  { %2812 = dma.done.wait [#allocation10], 3072  }
  0x6d   :  { %2813 = vsyncadd [#allocation10], 4294964224 }
  0x6e   :  { %2814 = dma.done.wait [#allocation13], 2048  }
  0x6f   :  { %2815 = vsyncadd [#allocation13], 4294965248  ;;  %v135_v0 = vld [vmem:[#allocation3] sm:$0xff]  ;;  %v137_v1 = vld [vmem:[#allocation3 + $0x10] sm:$0xff]  ;;  %v2830_v39 = vmov 0   ;;  %vm2832_vm0 = vmmov 0  }
  0x70   :  { %v136_v2 = vld [vmem:[#allocation3 + $0x8] sm:$0xff]  ;;  %149 = vadd.xlane.f32.xlu0 %v135_v0  ;;  %153 = vadd.xlane.f32.xlu1 %v137_v1  ;;  %v138_v3 = vld [vmem:[#allocation3 + $0x18] sm:$0xff]  ;;  %v2474_v4 = vld [vmem:[#allocation8 + $0x4] ss:$12 sps:$4 sm:$0xff]   ;;  %vm503_vm1 = vcmask 261120   ;;  %s2834_s20 = smov 32  }
  0x71   :  { %v2476_v5 = vld [vmem:[#allocation8] ss:$12 sps:$4 sm:$0xff]   ;;  %v2477_v6 = vld [vmem:[#allocation8 + $0x1c] ss:$12 sps:$4 sm:$0xff]   ;;  %393 = vmatprep.subr.bf16.mxu0 %v2474_v4  ;;  %v2480_v24 = vld [vmem:[#allocation8 + $0x18] ss:$12 sps:$4 sm:$0xff]   ;;  %425 = vmatprep.mubr.bf16.mxu0 %v2830_v39 }
  0x72   :  { %v2479_v7 = vld [vmem:[#allocation8 + $0x8] ss:$12 sps:$4 sm:$0xff]   ;;  %394 = vmatpush1.bf16.msra.mxu0 %v2476_v5  ;;  %v2483_v26 = vld [vmem:[#allocation8 + $0x20] ss:$12 sps:$4 sm:$0xff]   ;;  %v2484_v27 = vld [vmem:[#allocation8 + $0x30] ss:$12 sps:$4 sm:$0xff]  }
  0x73   :  { %2320 = vmatprep.subr.bf16.mxu1 %v2479_v7  ;;  %395 = vmatprep.subr.bf16.mxu0 %v2477_v6  ;;  %v2481_v25 = vld [vmem:[#allocation8 + $0x34] ss:$12 sps:$4 sm:$0xff]   ;;  %v2485_v28 = vld [vmem:[#allocation8 + $0x4c] ss:$12 sps:$4 sm:$0xff]   ;;  %v2489_v31 = vld [vmem:[#allocation8 + $0x64] ss:$12 sps:$4 sm:$0xff]  }
  0x74   :  { %151 = vadd.xlane.f32.xlu0 %v136_v2  ;;  %155 = vadd.xlane.f32.xlu1 %v138_v3  ;;  %v2487_v29 = vld [vmem:[#allocation8 + $0x38] ss:$12 sps:$4 sm:$0xff]   ;;  %v2488_v30 = vld [vmem:[#allocation8 + $0x48] ss:$12 sps:$4 sm:$0xff]   ;;  %v2491_v32 = vld [vmem:[#allocation8 + $0x50] ss:$12 sps:$4 sm:$0xff]  }
  0x75   :  { %2321 = vmatpush3.bf16.msra.mxu1 %v2479_v7  ;;  %v2492_v33 = vld [vmem:[#allocation8 + $0x60] ss:$12 sps:$4 sm:$0xff]   ;;  %v2493_v34 = vld [vmem:[#allocation8 + $0x7c] ss:$12 sps:$4 sm:$0xff]   ;;  %v2496_v36 = vld [vmem:[#allocation8 + $0x78] ss:$12 sps:$4 sm:$0xff]  }
  0x76   :  { %396 = vmatpush1.bf16.msra.mxu0 %v2480_v24  ;;  %2322 = vmatprep.subr.bf16.mxu1 %v2483_v26  ;;  %v2495_v35 = vld [vmem:[#allocation8 + $0x68] ss:$12 sps:$4 sm:$0xff]   ;;  %v2499_v38 = vld [vmem:[#allocation8 + $0x80] ss:$12 sps:$4 sm:$0xff]   ;;  %v2500_v40 = vld [vmem:[#allocation8 + $0x90] ss:$12 sps:$4 sm:$0xff]  }
  0x77   :  { %397 = vmatprep.subr.bf16.mxu0 %v2481_v25  ;;  %v2497_v37 = vld [vmem:[#allocation8 + $0x94] ss:$12 sps:$4 sm:$0xff]   ;;  %v2501_v41 = vld [vmem:[#allocation8 + $0xac] ss:$12 sps:$4 sm:$0xff]   ;;  %v2505_v44 = vld [vmem:[#allocation8 + $0xb0] ss:$12 sps:$4 sm:$0xff]  }
  0x78   :  { %v2503_v42 = vld [vmem:[#allocation8 + $0x98] ss:$12 sps:$4 sm:$0xff]   ;;  %v2504_v43 = vld [vmem:[#allocation8 + $0xa8] ss:$12 sps:$4 sm:$0xff]   ;;  %v2154_v59 = vld [vmem:[%s3421_s2] ss:$0 sm:$0xff] }
  0x79   :  { %2323 = vmatpush3.bf16.msra.mxu1 %v2483_v26  ;;  %vm551_vm2 = vcmask 130048   ;;  %vm750_vm3 = vcmask 523520   ;;  %vm878_vm4 = vcmask 785920   ;;  %vm1006_vm5 = vcmask 1048320  }
  0x7a   :  { %398 = vmatpush1.bf16.msra.mxu0 %v2484_v27  ;;  %2324 = vmatprep.subr.bf16.mxu1 %v2487_v29 }
  0x7b   :  { %399 = vmatprep.subr.bf16.mxu0 %v2485_v28 }
  0x7d   :  { %2325 = vmatpush3.bf16.msra.mxu1 %v2487_v29 }
  0x7e   :  { %400 = vmatpush1.bf16.msra.mxu0 %v2488_v30  ;;  %2326 = vmatprep.subr.bf16.mxu1 %v2491_v32 }
  0x7f   :  { %401 = vmatprep.subr.bf16.mxu0 %v2489_v31 }
  0x81   :  { %2327 = vmatpush3.bf16.msra.mxu1 %v2491_v32 }
  0x82   :  { %402 = vmatpush1.bf16.msra.mxu0 %v2492_v33  ;;  %2328 = vmatprep.subr.bf16.mxu1 %v2495_v35 }
  0x83   :  { %403 = vmatprep.subr.bf16.mxu0 %v2493_v34 }
  0x85   :  { %2329 = vmatpush3.bf16.msra.mxu1 %v2495_v35 }
  0x86   :  { %404 = vmatpush1.bf16.msra.mxu0 %v2496_v36  ;;  %2330 = vmatprep.subr.bf16.mxu1 %v2499_v38 }
  0x87   :  { %405 = vmatprep.subr.bf16.mxu0 %v2497_v37 }
  0x89   :  { %2331 = vmatpush3.bf16.msra.mxu1 %v2499_v38 }
  0x8a   :  { %406 = vmatpush1.bf16.msra.mxu0 %v2500_v40  ;;  %2332 = vmatprep.subr.bf16.mxu1 %v2503_v42 }
  0x8b   :  { %407 = vmatprep.subr.bf16.mxu0 %v2501_v41 }
  0x8d   :  { %2333 = vmatpush3.bf16.msra.mxu1 %v2503_v42 }
  0x8e   :  { %408 = vmatpush1.bf16.msra.mxu0 %v2504_v43  ;;  %2334 = vmatprep.subr.bf16.mxu1 %v2505_v44 }
  0x91   :  { %2335 = vmatpush3.bf16.msra.mxu1 %v2505_v44 }
  0xfd   :  { %v150_v8 = vpop.xlane.xlu0 %149  ;;  %v154_v9 = vpop.xlane.xlu1 %153 }
  0xfe   :  { %v158_v10 = vmul.f32 0.0078125, %v150_v8  ;;  %v160_v11 = vmul.f32 0.0078125, %v154_v9 }
 0x100   :  { %v3019_v12 = vsub.f32 %v135_v0, %v158_v10  ;;  %v3021_v13 = vsub.f32 %v137_v1, %v160_v11  ;;  %v2155_v0 = vld [vmem:[%s3422_s3] ss:$0 sm:$0xff] }
 0x101   :  { %v152_v14 = vpop.xlane.xlu0 %151  ;;  %v156_v15 = vpop.xlane.xlu1 %155 }
 0x102   :  { %v159_v16 = vmul.f32 0.0078125, %v152_v14  ;;  %v166_v17 = vmul.f32 %v3019_v12, %v3019_v12  ;;  %v161_v18 = vmul.f32 0.0078125, %v156_v15  ;;  %v168_v21 = vmul.f32 %v3021_v13, %v3021_v13 }
 0x103   :  { %v2831_v14 = vmov 0.0  }
 0x104   :  { %v3025_v19 = vsub.f32 %v136_v2, %v159_v16  ;;  %170 = vadd.xlane.f32.xlu0 %v166_v17  ;;  %v3027_v20 = vsub.f32 %v138_v3, %v161_v18  ;;  %2340 = vmatprep.subr.bf16.mxu0 %v2831_v14  ;;  %v248_v17 = vld [vmem:[%s3424_s5] sm:$0x7]  ;;  %s2833_s5 = smov 96  }
 0x105   :  { %2352 = vmatprep.subr.bf16.mxu1 %v2831_v14 }
 0x106   :  { %v167_v22 = vmul.f32 %v3025_v19, %v3025_v19  ;;  %v169_v23 = vmul.f32 %v3027_v20, %v3027_v20 }
 0x108   :  { %174 = vadd.xlane.f32.xlu0 %v168_v21  ;;  %172 = vadd.xlane.f32.xlu1 %v167_v22 }
 0x10c   :  { %176 = vadd.xlane.f32.xlu1 %v169_v23 }
 0x191   :  { %v171_v45 = vpop.xlane.xlu0 %170 }
 0x192   :  { %v178_v46 = vmul.f32 0.0078125, %v171_v45 }
 0x194   :  { %v182_v47 = vadd.f32 1e-06, %v178_v46 }
 0x195   :  { %v173_v48 = vpop.xlane.xlu1 %172  ;;  %v175_v49 = vpop.xlane.xlu0 %174 }
 0x196   :  { %2554 = vrsqrt.f32 %v182_v47  ;;  %v179_v50 = vmul.f32 0.0078125, %v173_v48  ;;  %v180_v51 = vmul.f32 0.0078125, %v175_v49 }
 0x198   :  { %v183_v52 = vadd.f32 1e-06, %v179_v50  ;;  %v184_v53 = vadd.f32 1e-06, %v180_v51 }
 0x199   :  { %v177_v54 = vpop.xlane.xlu1 %176 }
 0x19a   :  { %2556 = vrsqrt.f32 %v183_v52  ;;  %v181_v55 = vmul.f32 0.0078125, %v177_v54 }
 0x19b   :  { %2558 = vrsqrt.f32 %v184_v53 }
 0x19c   :  { %v185_v56 = vadd.f32 1e-06, %v181_v55 }
 0x19e   :  { %2560 = vrsqrt.f32 %v185_v56 }
 0x1a0   :  { %v2555_v57 = vpop.eup %2554 }
 0x1a1   :  { %v190_v58 = vmul.f32 %v2555_v57, %v3019_v12 }
 0x1a3   :  { %v200_v63 = vmul.f32 %v2154_v59, %v190_v58 }
 0x1a4   :  { %v2557_v60 = vpop.eup %2556 }
 0x1a5   :  { %v2559_v61 = vpop.eup %2558  ;;  %v191_v62 = vmul.f32 %v2557_v60, %v3025_v19  ;;  %v210_v4 = vadd.f32 %v2155_v0, %v200_v63 }
 0x1a6   :  { %v192_v1 = vmul.f32 %v2559_v61, %v3021_v13  ;;  %v250_v13 = vlaneseq }
 0x1a7   :  { %v201_v2 = vmul.f32 %v2154_v59, %v191_v62 }
 0x1a8   :  { %v2561_v3 = vpop.eup %2560  ;;  %v202_v7 = vmul.f32 %v2154_v59, %v192_v1  ;;  %v3053_v15 = vshrl.u32 %v250_v13, 7 }
 0x1a9   :  { %v211_v5 = vadd.f32 %v2155_v0, %v201_v2  ;;  %v193_v6 = vmul.f32 %v2561_v3, %v3027_v20 }
 0x1aa   :  { %v212_v10 = vadd.f32 %v2155_v0, %v202_v7  ;;  %v252_v16 = vsub.s32 0, %v3053_v15  ;;  %v256_v18 = vsub.s32 1, %v3053_v15  ;;  %v260_v19 = vsub.s32 2, %v3053_v15 }
 0x1ab   :  { %v214_v8 = vpack.c.bf16 %v211_v5, %v210_v4  ;;  %v203_v9 = vmul.f32 %v2154_v59, %v193_v6 }
 0x1ac   :  { %v253_v20 = vrot.slane %v248_v17, %v252_v16  ;;  %v257_v22 = vrot.slane %v248_v17, %v256_v18  ;;  %v261_v24 = vrot.slane %v248_v17, %v260_v19 }
 0x1ad   :  { %426 = vmatmul.mubr.bf16.vlgmr.msra.gmra.mrb[0].mxu0 %v214_v8  ;;  %2336 = vmatprep.mubr.bf16.mxu1 %v214_v8  ;;  %v213_v11 = vadd.f32 %v2155_v0, %v203_v9 }
 0x1ae   :  { %435 = vmatprep.mubr.bf16.mxu0 %v2830_v39 }
 0x1af   :  { %v215_v12 = vpack.c.bf16 %v213_v11, %v212_v10  ;;  %v501_v10 = vld [vmem:[#allocation6] sm:$0xff] }
 0x1b1   :  { %2337 = vmatmul.mubr.bf16.vlgmr.msra.gmra.mrb[0].mxu1 %v215_v12 }
 0x1b2   :  { %2354 = vmatprep.mubr.msk.bf16.mxu1 %vm2832_vm0, %v2831_v14 }
 0x1b5   :  { %436 = vmatmul.mubr.bf16.gmra.mrb[4].mxu0 %v215_v12  ;;  %v502_v12 = vld [vmem:[#allocation6 + $0x8] sm:$0xff] }
 0x1b6   :  { %2342 = vmatprep.mubr.msk.bf16.mxu0 %vm2832_vm0, %v2831_v14 }
 0x280   :  { %v427_v21 = vpop.f32.mrb[0].mxu0 }
 0x281   :  { %v429_v23 = vpop.f32.mrb[1].mxu0  ;;  %v428_v26 = vadd.f32 %v427_v21, %v253_v20 }
 0x282   :  { %v431_v25 = vpop.f32.mrb[2].mxu0  ;;  %v430_v29 = vadd.f32 %v429_v23, %v257_v22 }
 0x283   :  { %v432_v27 = vadd.f32 %v431_v25, %v253_v20  ;;  %v433_v28 = vpop.f32.mrb[3].mxu0 }
 0x284   :  { %v434_v30 = vadd.f32 %v433_v28, %v257_v22  ;;  %v2338_v31 = vpop.f32.mrb[0].mxu1 }
 0x285   :  { %v495_v32 = vpack.c.bf16 %v432_v27, %v428_v26  ;;  %v489_v33 = vadd.f32 %v2338_v31, %v261_v24  ;;  %v480_v34 = vpop.f32.mrb[1].mxu1 }
 0x286   :  { %v497_v35 = vpack.c.bf16 %v434_v30, %v430_v29  ;;  %v2339_v36 = vpop.f32.mrb[2].mxu1  ;;  %v481_v40 = vadd.f32 %v480_v34, %v261_v24 }
 0x287   :  { %v492_v37 = vadd.f32 %v2339_v36, %v261_v24  ;;  %622 = vrot.lane.b32.xlu1 %v495_v32, %s2833_s5  ;;  %v483_v38 = vpop.f32.mrb[3].mxu1 }
 0x288   :  { %v484_v41 = vadd.f32 %v483_v38, %v261_v24  ;;  %625 = vrot.lane.b32.xlu0 %v497_v35, %s2833_s5  ;;  %v437_v42 = vpop.f32.mrb[4].mxu0  ;;  %v508_v43 = vsel %vm503_vm1, %v497_v35, 0 }
 0x289   :  { %v3068_v44 = vpack.c.bf16 %v492_v37, %v489_v33  ;;  %v439_v45 = vpop.f32.mrb[5].mxu0  ;;  %2341 = vmatpush3.bf16.xpose.msra.mxu0 %v508_v43  ;;  %v438_v48 = vadd.f32 %v437_v42, %v253_v20 }
 0x28a   :  { %v3070_v46 = vpack.c.bf16 %v484_v41, %v481_v40  ;;  %v441_v47 = vpop.f32.mrb[6].mxu0  ;;  %2346 = vmatprep.subr.bf16.mxu0 %v2831_v14  ;;  %v440_v51 = vadd.f32 %v439_v45, %v257_v22 }
 0x28b   :  { %v442_v49 = vadd.f32 %v441_v47, %v253_v20  ;;  %754 = vrot.lane.b32.xlu1 %v497_v35, %s3439_s10  ;;  %v443_v50 = vpop.f32.mrb[7].mxu0 }
 0x28c   :  { %v444_v52 = vadd.f32 %v443_v50, %v257_v22  ;;  %882 = vrot.lane.b32.xlu0 %v497_v35, %s2834_s20 }
 0x28d   :  { %v496_v53 = vpack.c.bf16 %v442_v49, %v438_v48 }
 0x28e   :  { %v498_v54 = vpack.c.bf16 %v444_v52, %v440_v51  ;;  %v1009_v51 = vld [vmem:[#allocation6 + $0x10] sm:$0xff] }
 0x28f   :  { %752 = vrot.lane.b32.xlu1 %v495_v32, %s3439_s10 }
 0x290   :  { %2343 = vmatmul.mubr.msk.bf16.vlgmr.msra.gmra.mrb[8].mxu0 %vm503_vm1, %v495_v32  ;;  %1131 = vrot.lane.b32.xlu0 %v498_v54, %s2833_s5  ;;  %v1015_v0 = vsel %vm503_vm1, %v498_v54, 0 }
 0x291   :  { %2347 = vmatpush3.bf16.msra.mxu0 %v3070_v46  ;;  %2348 = vmatprep.mubr.msk.bf16.mxu0 %vm2832_vm0, %v2831_v14 }
 0x292   :  { %2358 = vmatprep.subr.bf16.mxu0 %v2831_v14 }
 0x293   :  { %880 = vrot.lane.b32.xlu1 %v495_v32, %s2834_s20 }
 0x294   :  { %1259 = vrot.lane.b32.xlu0 %v498_v54, %s3439_s10 }
 0x297   :  { %1128 = vrot.lane.b32.xlu1 %v496_v53, %s2833_s5 }
 0x298   :  { %1386 = vrot.lane.b32.xlu0 %v498_v54, %s2834_s20 }
 0x29b   :  { %1257 = vrot.lane.b32.xlu1 %v496_v53, %s3439_s10 }
 0x29f   :  { %1384 = vrot.lane.b32.xlu1 %v496_v53, %s2834_s20 }
 0x2f9   :  { %v623_v55 = vpop.permute.xlu1 %622 }
 0x2fa   :  { %v626_v56 = vpop.permute.xlu0 %625 }
 0x2fb   :  { %v631_v57 = vsel %vm503_vm1, %v626_v56, 0 }
 0x2fc   :  { %2353 = vmatpush3.bf16.xpose.msra.mxu1 %v631_v57 }
 0x2fd   :  { %2364 = vmatprep.subr.bf16.mxu1 %v2831_v14  ;;  %v755_v58 = vpop.permute.xlu1 %754 }
 0x2fe   :  { %v760_v59 = vsel %vm503_vm1, %v755_v58, 0  ;;  %v883_v60 = vpop.permute.xlu0 %882 }
 0x2ff   :  { %v888_v62 = vsel %vm503_vm1, %v883_v60, 0 }
 0x301   :  { %v753_v61 = vpop.permute.xlu1 %752 }
 0x302   :  { %v1132_v1 = vpop.permute.xlu0 %1131 }
 0x303   :  { %2355 = vmatmul.mubr.msk.bf16.vlgmr.msra.gmra.mrb[4].mxu1 %vm503_vm1, %v623_v55  ;;  %v1137_v2 = vsel %vm503_vm1, %v1132_v1, 0 }
 0x304   :  { %2365 = vmatpush3.bf16.xpose.msra.mxu1 %v760_v59  ;;  %2366 = vmatprep.mubr.msk.bf16.mxu1 %vm2832_vm0, %v2831_v14 }
 0x305   :  { %2376 = vmatprep.subr.bf16.mxu1 %v2831_v14  ;;  %v881_v63 = vpop.permute.xlu1 %880 }
 0x306   :  { %v1260_v3 = vpop.permute.xlu0 %1259 }
 0x307   :  { %v1265_v5 = vsel %vm503_vm1, %v1260_v3, 0 }
 0x309   :  { %v1129_v4 = vpop.permute.xlu1 %1128 }
 0x30a   :  { %v1387_v6 = vpop.permute.xlu0 %1386 }
 0x30b   :  { %2367 = vmatmul.mubr.msk.bf16.vlgmr.msra.gmra.mrb[8].mxu1 %vm503_vm1, %v753_v61  ;;  %v1392_v8 = vsel %vm503_vm1, %v1387_v6, 0 }
 0x30c   :  { %2377 = vmatpush3.bf16.xpose.msra.mxu1 %v888_v62  ;;  %2378 = vmatprep.mubr.msk.bf16.mxu1 %vm2832_vm0, %v2831_v14 }
 0x30d   :  { %2388 = vmatprep.subr.bf16.mxu1 %v2831_v14  ;;  %v1258_v7 = vpop.permute.xlu1 %1257 }
 0x311   :  { %v1385_v9 = vpop.permute.xlu1 %1384 }
 0x313   :  { %2379 = vmatmul.mubr.msk.bf16.vlgmr.msra.gmra.mrb[12].mxu1 %vm503_vm1, %v881_v63 }
 0x314   :  { %2389 = vmatpush3.bf16.xpose.msra.mxu1 %v1015_v0  ;;  %2390 = vmatprep.mubr.msk.bf16.mxu1 %vm2832_vm0, %v2831_v14 }
 0x315   :  { %2400 = vmatprep.subr.bf16.mxu1 %v2831_v14 }
 0x31b   :  { %2391 = vmatmul.mubr.msk.bf16.vlgmr.msra.gmra.mrb[16].mxu1 %vm503_vm1, %v496_v53  ;;  %v1010_v53 = vld [vmem:[#allocation6 + $0x18] sm:$0xff] }
 0x31c   :  { %2401 = vmatpush3.bf16.xpose.msra.mxu1 %v1137_v2  ;;  %2402 = vmatprep.mubr.msk.bf16.mxu1 %vm2832_vm0, %v2831_v14 }
 0x31d   :  { %2412 = vmatprep.subr.bf16.mxu1 %v2831_v14 }
 0x323   :  { %2403 = vmatmul.mubr.msk.bf16.vlgmr.msra.gmra.mrb[20].mxu1 %vm503_vm1, %v1129_v4 }
 0x324   :  { %2413 = vmatpush3.bf16.xpose.msra.mxu1 %v1265_v5  ;;  %2414 = vmatprep.mubr.msk.bf16.mxu1 %vm2832_vm0, %v2831_v14 }
 0x325   :  { %2424 = vmatprep.subr.bf16.mxu1 %v2831_v14 }
 0x32b   :  { %2415 = vmatmul.mubr.msk.bf16.vlgmr.msra.gmra.mrb[24].mxu1 %vm503_vm1, %v1258_v7 }
 0x32c   :  { %2425 = vmatpush3.bf16.xpose.msra.mxu1 %v1392_v8  ;;  %2426 = vmatprep.mubr.msk.bf16.mxu1 %vm2832_vm0, %v2831_v14 }
 0x333   :  { %2427 = vmatmul.mubr.msk.bf16.vlgmr.msra.gmra.mrb[28].mxu1 %vm503_vm1, %v1385_v9 }
 0x363   :  { %v544_v11 = vpop.f32.mrb[8].mxu0 }
 0x364   :  { %v545_v13 = vadd.f32 %v544_v11, %v501_v10  ;;  %v2344_v17 = vpop.f32.mrb[9].mxu0 }
 0x365   :  { %v547_v19 = vpop.f32.mrb[10].mxu0 }
 0x366   :  { %v548_v20 = vadd.f32 %v547_v19, %v502_v12  ;;  %v2345_v21 = vpop.f32.mrb[11].mxu0  ;;  %v552_v22 = vsel %vm551_vm2, %v545_v13, -inf }
 0x367   :  { %553 = vmax.xlane.f32.xlu0 %v552_v22 }
 0x368   :  { %v555_v23 = vsel %vm551_vm2, %v548_v20, -inf }
 0x369   :  { %556 = vmax.xlane.f32.xlu1 %v555_v23 }
 0x3d6   :  { %v667_v24 = vpop.f32.mrb[4].mxu1 }
 0x3d7   :  { %v3122_v25 = vadd.f32 %v667_v24, %v501_v10  ;;  %v2356_v26 = vpop.f32.mrb[5].mxu1 }
 0x3d8   :  { %v670_v27 = vpop.f32.mrb[6].mxu1 }
 0x3d9   :  { %v3124_v28 = vadd.f32 %v670_v27, %v502_v12  ;;  %v2357_v29 = vpop.f32.mrb[7].mxu1  ;;  %v674_v30 = vsel %vm551_vm2, %v3122_v25, -inf }
 0x3da   :  { %675 = vmax.xlane.f32.xlu0 %v674_v30 }
 0x3db   :  { %v677_v31 = vsel %vm551_vm2, %v3124_v28, -inf }
 0x3de   :  { %678 = vmax.xlane.f32.xlu0 %v677_v31  ;;  %v796_v32 = vpop.f32.mrb[8].mxu1 }
 0x3df   :  { %v3130_v33 = vadd.f32 %v796_v32, %v501_v10  ;;  %v2368_v34 = vpop.f32.mrb[9].mxu1 }
 0x3e0   :  { %v799_v35 = vpop.f32.mrb[10].mxu1 }
 0x3e1   :  { %v3132_v36 = vadd.f32 %v799_v35, %v502_v12  ;;  %v2369_v37 = vpop.f32.mrb[11].mxu1  ;;  %v803_v38 = vsel %vm551_vm2, %v3130_v33, -inf }
 0x3e2   :  { %804 = vmax.xlane.f32.xlu0 %v803_v38 }
 0x3e3   :  { %v806_v40 = vsel %vm551_vm2, %v3132_v36, -inf }
 0x3e4   :  { %807 = vmax.xlane.f32.xlu1 %v806_v40 }
 0x3e6   :  { %v924_v41 = vpop.f32.mrb[12].mxu1 }
 0x3e7   :  { %v3138_v42 = vadd.f32 %v924_v41, %v501_v10  ;;  %v2380_v43 = vpop.f32.mrb[13].mxu1 }
 0x3e8   :  { %v927_v45 = vpop.f32.mrb[14].mxu1 }
 0x3e9   :  { %v3140_v47 = vadd.f32 %v927_v45, %v502_v12  ;;  %v2381_v48 = vpop.f32.mrb[15].mxu1  ;;  %v931_v49 = vsel %vm551_vm2, %v3138_v42, -inf }
 0x3ea   :  { %932 = vmax.xlane.f32.xlu0 %v931_v49 }
 0x3eb   :  { %v934_v50 = vsel %vm551_vm2, %v3140_v47, -inf }
 0x3ec   :  { %935 = vmax.xlane.f32.xlu1 %v934_v50 }
 0x3ee   :  { %v1051_v52 = vpop.f32.mrb[16].mxu1 }
 0x3ef   :  { %v3146_v54 = vadd.f32 %v1051_v52, %v1009_v51  ;;  %v2392_v55 = vpop.f32.mrb[17].mxu1 }
 0x3f0   :  { %v1054_v56 = vpop.f32.mrb[18].mxu1 }
 0x3f1   :  { %v3148_v57 = vadd.f32 %v1054_v56, %v1010_v53  ;;  %v2393_v58 = vpop.f32.mrb[19].mxu1  ;;  %v1058_v59 = vsel %vm551_vm2, %v3146_v54, -inf }
 0x3f2   :  { %1059 = vmax.xlane.f32.xlu0 %v1058_v59 }
 0x3f3   :  { %v1061_v60 = vsel %vm551_vm2, %v3148_v57, -inf }
 0x3f4   :  { %1062 = vmax.xlane.f32.xlu1 %v1061_v60  ;;  %v554_v61 = vpop.xlane.xlu0 %553 }
 0x3f5   :  { %v558_v62 = vsub.f32 %v545_v13, %v554_v61 }
 0x3f6   :  { %v557_v63 = vpop.xlane.xlu1 %556  ;;  %v1173_v0 = vpop.f32.mrb[20].mxu1 }
 0x3f7   :  { %v560_v1 = vmul.f32 1.442695, %v558_v62  ;;  %v559_v2 = vsub.f32 %v548_v20, %v557_v63  ;;  %v3154_v3 = vadd.f32 %v1173_v0, %v1009_v51  ;;  %v2404_v4 = vpop.f32.mrb[21].mxu1 }
 0x3f8   :  { %v1176_v5 = vpop.f32.mrb[22].mxu1 }
 0x3f9   :  { %2562 = vpow2.f32 %v560_v1  ;;  %v562_v6 = vmul.f32 1.442695, %v559_v2  ;;  %v3156_v7 = vadd.f32 %v1176_v5, %v1010_v53  ;;  %v2405_v8 = vpop.f32.mrb[23].mxu1  ;;  %v1180_v9 = vsel %vm551_vm2, %v3154_v3, -inf }
 0x3fa   :  { %1181 = vmax.xlane.f32.xlu0 %v1180_v9 }
 0x3fb   :  { %2564 = vpow2.f32 %v562_v6  ;;  %v1183_v10 = vsel %vm551_vm2, %v3156_v7, -inf }
 0x3fc   :  { %1184 = vmax.xlane.f32.xlu1 %v1183_v10 }
 0x3fe   :  { %v1301_v11 = vpop.f32.mrb[24].mxu1 }
 0x3ff   :  { %v3162_v12 = vadd.f32 %v1301_v11, %v1009_v51  ;;  %v2416_v13 = vpop.f32.mrb[25].mxu1 }
 0x400   :  { %v1304_v17 = vpop.f32.mrb[26].mxu1 }
 0x401   :  { %v3164_v19 = vadd.f32 %v1304_v17, %v1010_v53  ;;  %v2417_v20 = vpop.f32.mrb[27].mxu1  ;;  %v1308_v21 = vsel %vm551_vm2, %v3162_v12, -inf }
 0x402   :  { %1309 = vmax.xlane.f32.xlu0 %v1308_v21 }
 0x403   :  { %v3168_v22 = vpop.eup %2562  ;;  %v1311_v23 = vsel %vm551_vm2, %v3164_v19, -inf }
 0x404   :  { %1312 = vmax.xlane.f32.xlu1 %v1311_v23  ;;  %v564_v24 = vsel %vm551_vm2, %v3168_v22, 0.0 }
 0x405   :  { %v3174_v26 = vpop.eup %2564 }
 0x406   :  { %v1428_v27 = vpop.f32.mrb[28].mxu1  ;;  %565 = vadd.xlane.f32.xlu0 %v564_v24  ;;  %v567_v29 = vsel %vm551_vm2, %v3174_v26, 0.0 }
 0x407   :  { %v3178_v30 = vadd.f32 %v1428_v27, %v1009_v51  ;;  %v2428_v31 = vpop.f32.mrb[29].mxu1 }
 0x408   :  { %568 = vadd.xlane.f32.xlu1 %v567_v29  ;;  %v1431_v32 = vpop.f32.mrb[30].mxu1 }
 0x409   :  { %v3180_v34 = vadd.f32 %v1431_v32, %v1010_v53  ;;  %v2429_v35 = vpop.f32.mrb[31].mxu1  ;;  %v1435_v37 = vsel %vm551_vm2, %v3178_v30, -inf }
 0x40a   :  { %1436 = vmax.xlane.f32.xlu0 %v1435_v37 }
 0x40b   :  { %v1438_v38 = vsel %vm551_vm2, %v3180_v34, -inf }
 0x40c   :  { %1439 = vmax.xlane.f32.xlu1 %v1438_v38 }
 0x41d   :  { %826 = vrot.lane.b32.xlu1 %v3070_v46, %s3439_s10 }
 0x420   :  { %698 = vrot.lane.b32.xlu0 %v3070_v46, %s2833_s5 }
 0x467   :  { %v676_v40 = vpop.xlane.xlu0 %675 }
 0x468   :  { %v680_v41 = vsub.f32 %v3122_v25, %v676_v40 }
 0x46a   :  { %v682_v43 = vmul.f32 1.442695, %v680_v41 }
 0x46b   :  { %v679_v45 = vpop.xlane.xlu0 %678 }
 0x46c   :  { %2566 = vpow2.f32 %v682_v43  ;;  %v681_v48 = vsub.f32 %v3124_v28, %v679_v45 }
 0x46e   :  { %v684_v49 = vmul.f32 1.442695, %v681_v48 }
 0x46f   :  { %v805_v50 = vpop.xlane.xlu0 %804 }
 0x470   :  { %2568 = vpow2.f32 %v684_v49  ;;  %v809_v51 = vsub.f32 %v3130_v33, %v805_v50 }
 0x471   :  { %v808_v52 = vpop.xlane.xlu1 %807 }
 0x472   :  { %v811_v53 = vmul.f32 1.442695, %v809_v51  ;;  %v810_v55 = vsub.f32 %v3132_v36, %v808_v52 }
 0x474   :  { %2570 = vpow2.f32 %v811_v53  ;;  %v813_v56 = vmul.f32 1.442695, %v810_v55 }
 0x476   :  { %v3194_v58 = vpop.eup %2566  ;;  %2572 = vpow2.f32 %v813_v56 }
 0x477   :  { %v933_v25 = vpop.xlane.xlu0 %932  ;;  %v686_v59 = vsel %vm551_vm2, %v3194_v58, 0.0 }
 0x478   :  { %v937_v28 = vsub.f32 %v3138_v42, %v933_v25  ;;  %687 = vadd.xlane.f32.xlu0 %v686_v59 }
 0x479   :  { %v936_v60 = vpop.xlane.xlu1 %935 }
 0x47a   :  { %v3199_v61 = vpop.eup %2568  ;;  %v939_v33 = vmul.f32 1.442695, %v937_v28  ;;  %v938_v62 = vsub.f32 %v3140_v47, %v936_v60 }
 0x47b   :  { %v689_v36 = vsel %vm551_vm2, %v3199_v61, 0.0 }
 0x47c   :  { %2574 = vpow2.f32 %v939_v33  ;;  %v941_v63 = vmul.f32 1.442695, %v938_v62  ;;  %690 = vadd.xlane.f32.xlu1 %v689_v36 }
 0x47e   :  { %v3204_v0 = vpop.eup %2570  ;;  %2576 = vpow2.f32 %v941_v63 }
 0x47f   :  { %v1060_v1 = vpop.xlane.xlu0 %1059  ;;  %v815_v42 = vsel %vm551_vm2, %v3204_v0, 0.0 }
 0x480   :  { %v3208_v2 = vpop.eup %2572  ;;  %v1064_v4 = vsub.f32 %v3146_v54, %v1060_v1  ;;  %816 = vadd.xlane.f32.xlu0 %v815_v42 }
 0x481   :  { %v1063_v5 = vpop.xlane.xlu1 %1062  ;;  %v818_v47 = vsel %vm551_vm2, %v3208_v2, 0.0 }
 0x482   :  { %v1066_v6 = vmul.f32 1.442695, %v1064_v4  ;;  %v1065_v8 = vsub.f32 %v3148_v57, %v1063_v5  ;;  %819 = vadd.xlane.f32.xlu1 %v818_v47 }
 0x484   :  { %2578 = vpow2.f32 %v1066_v6  ;;  %v1068_v9 = vmul.f32 1.442695, %v1065_v8 }
 0x486   :  { %v3214_v10 = vpop.eup %2574  ;;  %2580 = vpow2.f32 %v1068_v9 }
 0x487   :  { %v1182_v11 = vpop.xlane.xlu0 %1181  ;;  %v943_v13 = vsel %vm551_vm2, %v3214_v10, 0.0 }
 0x488   :  { %v3218_v17 = vpop.eup %2576  ;;  %v1186_v54 = vsub.f32 %v3154_v3, %v1182_v11  ;;  %944 = vadd.xlane.f32.xlu0 %v943_v13 }
 0x489   :  { %v1185_v20 = vpop.xlane.xlu1 %1184  ;;  %v946_v21 = vsel %vm551_vm2, %v3218_v17, 0.0 }
 0x48a   :  { %v1188_v57 = vmul.f32 1.442695, %v1186_v54  ;;  %v1187_v23 = vsub.f32 %v3156_v7, %v1185_v20  ;;  %947 = vadd.xlane.f32.xlu1 %v946_v21 }
 0x48c   :  { %2582 = vpow2.f32 %v1188_v57  ;;  %v1190_v24 = vmul.f32 1.442695, %v1187_v23 }
 0x48e   :  { %v3224_v27 = vpop.eup %2578  ;;  %2584 = vpow2.f32 %v1190_v24 }
 0x48f   :  { %v1310_v29 = vpop.xlane.xlu0 %1309  ;;  %v1070_v31 = vsel %vm551_vm2, %v3224_v27, 0.0 }
 0x490   :  { %v3228_v32 = vpop.eup %2580  ;;  %1071 = vadd.xlane.f32.xlu0 %v1070_v31  ;;  %v1314_v36 = vsub.f32 %v3162_v12, %v1310_v29 }
 0x491   :  { %v1313_v3 = vpop.xlane.xlu1 %1312  ;;  %v1073_v35 = vsel %vm551_vm2, %v3228_v32, 0.0 }
 0x492   :  { %v1315_v37 = vsub.f32 %v3164_v19, %v1313_v3  ;;  %1074 = vadd.xlane.f32.xlu1 %v1073_v35  ;;  %v1316_v63 = vmul.f32 1.442695, %v1314_v36 }
 0x493   :  { %v566_v7 = vpop.xlane.xlu0 %565 }
 0x494   :  { %v1318_v38 = vmul.f32 1.442695, %v1315_v37  ;;  %2586 = vrcp.f32 %v566_v7 }
 0x495   :  { %v569_v40 = vpop.xlane.xlu1 %568 }
 0x496   :  { %v3233_v41 = vpop.eup %2582  ;;  %2588 = vpow2.f32 %v1318_v38 }
 0x497   :  { %2590 = vrcp.f32 %v569_v40  ;;  %v1437_v43 = vpop.xlane.xlu0 %1436  ;;  %v1192_v45 = vsel %vm551_vm2, %v3233_v41, 0.0 }
 0x498   :  { %v3237_v48 = vpop.eup %2584  ;;  %v1441_v49 = vsub.f32 %v3178_v30, %v1437_v43  ;;  %1193 = vadd.xlane.f32.xlu1 %v1192_v45 }
 0x499   :  { %v1440_v50 = vpop.xlane.xlu1 %1439  ;;  %v1195_v52 = vsel %vm551_vm2, %v3237_v48, 0.0 }
 0x49a   :  { %v1443_v19 = vmul.f32 1.442695, %v1441_v49  ;;  %v1442_v51 = vsub.f32 %v3180_v34, %v1440_v50 }
 0x49b   :  { %v699_v33 = vpop.permute.xlu0 %698 }
 0x49c   :  { %2592 = vpow2.f32 %v1443_v19  ;;  %v1445_v53 = vmul.f32 1.442695, %v1442_v51  ;;  %1196 = vadd.xlane.f32.xlu1 %v1195_v52 }
 0x49d   :  { %v827_v42 = vpop.permute.xlu1 %826 }
 0x49e   :  { %2594 = vpow2.f32 %v1445_v53  ;;  %v2587_v55 = vpop.eup %2586 }
 0x49f   :  { %v572_v30 = vmul.f32 %v2587_v55, %v3168_v22  ;;  %2596 = vpow2.f32 %v1316_v63 }
 0x4a0   :  { %v3243_v56 = vpop.eup %2588 }
 0x4a1   :  { %v2591_v25 = vpop.eup %2590  ;;  %v1323_v59 = vsel %vm551_vm2, %v3243_v56, 0.0 }
 0x4a2   :  { %v573_v28 = vmul.f32 %v2591_v25, %v3174_v26  ;;  %1324 = vadd.xlane.f32.xlu1 %v1323_v59 }
 0x4a4   :  { %v574_v34 = vpack.c.bf16 %v573_v28, %v572_v30 }
 0x4a6   :  { %v3249_v60 = vpop.eup %2592  ;;  %2349 = vmatmul.mubr.msk.bf16.vlgmr.msra.gmra.mrb[12].mxu0 %vm551_vm2, %v574_v34  ;;  %954 = vrot.lane.b32.xlu0 %v3070_v46, %s2834_s20 }
 0x4a7   :  { %2359 = vmatpush3.bf16.msra.mxu0 %v699_v33  ;;  %v1447_v62 = vsel %vm551_vm2, %v3249_v60, 0.0  ;;  %2360 = vmatprep.mubr.msk.bf16.mxu0 %vm2832_vm0, %v2831_v14 }
 0x4a8   :  { %v3258_v22 = vpop.eup %2594  ;;  %1448 = vadd.xlane.f32.xlu1 %v1447_v62  ;;  %2370 = vmatprep.subr.bf16.mxu0 %v2831_v14 }
 0x4a9   :  { %v1450_v26 = vsel %vm551_vm2, %v3258_v22, 0.0  ;;  %v3266_v46 = vpop.eup %2596 }
 0x4aa   :  { %v1320_v1 = vsel %vm551_vm2, %v3266_v46, 0.0 }
 0x4ac   :  { %1451 = vadd.xlane.f32.xlu1 %v1450_v26 }
 0x4bd   :  { %1204 = vrot.lane.b32.xlu1 %v3068_v44, %s2833_s5 }
 0x4c5   :  { %1321 = vadd.xlane.f32.xlu0 %v1320_v1 }
 0x4db   :  { %1331 = vrot.lane.b32.xlu0 %v3068_v44, %s3439_s10 }
 0x4df   :  { %1458 = vrot.lane.b32.xlu0 %v3068_v44, %s2834_s20 }
 0x505   :  { %v688_v4 = vpop.xlane.xlu0 %687 }
 0x506   :  { %2598 = vrcp.f32 %v688_v4 }
 0x509   :  { %v691_v12 = vpop.xlane.xlu1 %690 }
 0x50a   :  { %2600 = vrcp.f32 %v691_v12 }
 0x50d   :  { %v817_v5 = vpop.xlane.xlu0 %816 }
 0x50e   :  { %2602 = vrcp.f32 %v817_v5 }
 0x50f   :  { %v820_v47 = vpop.xlane.xlu1 %819 }
 0x510   :  { %2604 = vrcp.f32 %v820_v47  ;;  %v2599_v6 = vpop.eup %2598 }
 0x511   :  { %v694_v9 = vmul.f32 %v2599_v6, %v3194_v58 }
 0x514   :  { %v2601_v8 = vpop.eup %2600 }
 0x515   :  { %v695_v11 = vmul.f32 %v2601_v8, %v3199_v61  ;;  %v945_v13 = vpop.xlane.xlu0 %944 }
 0x516   :  { %2606 = vrcp.f32 %v945_v13 }
 0x517   :  { %v948_v54 = vpop.xlane.xlu1 %947  ;;  %v696_v20 = vpack.c.bf16 %v695_v11, %v694_v9 }
 0x518   :  { %2608 = vrcp.f32 %v948_v54  ;;  %v2603_v21 = vpop.eup %2602 }
 0x519   :  { %2361 = vmatmul.mubr.msk.bf16.vlgmr.msra.gmra.mrb[16].mxu0 %vm551_vm2, %v696_v20  ;;  %v823_v58 = vmul.f32 %v2603_v21, %v3204_v0 }
 0x51a   :  { %v2605_v57 = vpop.eup %2604  ;;  %2371 = vmatpush3.bf16.msra.mxu0 %v827_v42  ;;  %2372 = vmatprep.mubr.msk.bf16.mxu0 %vm2832_vm0, %v2831_v14 }
 0x51b   :  { %v824_v23 = vmul.f32 %v2605_v57, %v3208_v2  ;;  %2382 = vmatprep.subr.bf16.mxu0 %v2831_v14 }
 0x51d   :  { %v1072_v61 = vpop.xlane.xlu0 %1071  ;;  %v825_v29 = vpack.c.bf16 %v824_v23, %v823_v58 }
 0x51e   :  { %2610 = vrcp.f32 %v1072_v61 }
 0x51f   :  { %v1075_v24 = vpop.xlane.xlu1 %1074 }
 0x520   :  { %2612 = vrcp.f32 %v1075_v24  ;;  %v2607_v31 = vpop.eup %2606 }
 0x521   :  { %2373 = vmatmul.mubr.msk.bf16.vlgmr.msra.gmra.mrb[20].mxu0 %vm551_vm2, %v825_v29  ;;  %v955_v3 = vpop.permute.xlu0 %954  ;;  %v951_v0 = vmul.f32 %v2607_v31, %v3214_v10  ;;  %v2506_v31 = vld [vmem:[#allocation9] sm:$0xff]  }
 0x522   :  { %v2609_v35 = vpop.eup %2608  ;;  %2383 = vmatpush3.bf16.msra.mxu0 %v955_v3  ;;  %2384 = vmatprep.mubr.msk.bf16.mxu0 %vm2832_vm0, %v2831_v14  ;;  %v2507_v3 = vld [vmem:[#allocation9 + $0x8] sm:$0xff]  }
 0x523   :  { %v952_v2 = vmul.f32 %v2609_v35, %v3218_v17  ;;  %2394 = vmatprep.subr.bf16.mxu0 %v2831_v14  ;;  %2436 = vmatprep.subr.bf16.mxu1 %v2506_v31  ;;  %v2508_v35 = vld [vmem:[#allocation9 + $0x10] sm:$0xff]  }
 0x524   :  { %2437 = vmatpush3.bf16.msra.mxu1 %v2506_v31 }
 0x525   :  { %v1194_v37 = vpop.xlane.xlu1 %1193  ;;  %v953_v7 = vpack.c.bf16 %v952_v2, %v951_v0  ;;  %2438 = vmatprep.subr.bf16.mxu1 %v2507_v3  ;;  %v2509_v0 = vld [vmem:[#allocation9 + $0x18] sm:$0xff]  }
 0x528   :  { %v2611_v38 = vpop.eup %2610  ;;  %2439 = vmatpush3.bf16.msra.mxu1 %v2507_v3 }
 0x529   :  { %2385 = vmatmul.mubr.msk.bf16.vlgmr.msra.gmra.mrb[24].mxu0 %vm551_vm2, %v953_v7  ;;  %v1197_v45 = vpop.xlane.xlu1 %1196  ;;  %v1078_v17 = vmul.f32 %v2611_v38, %v3224_v27  ;;  %2440 = vmatprep.subr.bf16.mxu1 %v2508_v35 }
 0x52a   :  { %v2613_v40 = vpop.eup %2612  ;;  %2395 = vmatpush3.bf16.msra.mxu0 %v3068_v44  ;;  %2396 = vmatprep.mubr.msk.bf16.mxu0 %vm2832_vm0, %v2831_v14  ;;  %2614 = vrcp.f32 %v1197_v45  ;;  %v2511_v45 = vld [vmem:[#allocation9 + $0x28] sm:$0xff]  }
 0x52b   :  { %v1079_v43 = vmul.f32 %v2613_v40, %v3228_v32  ;;  %2406 = vmatprep.subr.bf16.mxu0 %v2831_v14  ;;  %2616 = vrcp.f32 %v1194_v37 }
 0x52c   :  { %2441 = vmatpush3.bf16.msra.mxu1 %v2508_v35 }
 0x52d   :  { %v1080_v10 = vpack.c.bf16 %v1079_v43, %v1078_v17  ;;  %2442 = vmatprep.subr.bf16.mxu1 %v2509_v0  ;;  %v2510_v43 = vld [vmem:[#allocation9 + $0x20] sm:$0xff]  }
 0x52f   :  { %v1325_v49 = vpop.xlane.xlu1 %1324 }
 0x530   :  { %2618 = vrcp.f32 %v1325_v49  ;;  %2443 = vmatpush3.bf16.msra.mxu1 %v2509_v0  ;;  %v2513_v49 = vld [vmem:[#allocation9 + $0x38] sm:$0xff]  }
 0x531   :  { %2397 = vmatmul.mubr.msk.bf16.vlgmr.msra.gmra.mrb[28].mxu0 %vm551_vm2, %v1080_v10  ;;  %2444 = vmatprep.subr.bf16.mxu1 %v2510_v43  ;;  %v2512_v10 = vld [vmem:[#allocation9 + $0x30] sm:$0xff]  }
 0x532   :  { %2408 = vmatprep.mubr.msk.bf16.mxu0 %vm2832_vm0, %v2831_v14 }
 0x534   :  { %v2615_v50 = vpop.eup %2614  ;;  %2445 = vmatpush3.bf16.msra.mxu1 %v2510_v43  ;;  %v2520_v43 = vld [vmem:[#allocation11 + $0x20] ss:$8 sps:$4 sm:$0xff]  }
 0x535   :  { %v1449_v44 = vpop.xlane.xlu1 %1448  ;;  %v2617_v51 = vpop.eup %2616  ;;  %v1201_v32 = vmul.f32 %v2615_v50, %v3237_v48  ;;  %2446 = vmatprep.subr.bf16.mxu1 %v2511_v45 }
 0x536   :  { %v1200_v52 = vmul.f32 %v2617_v51, %v3233_v41 }
 0x538   :  { %v1202_v27 = vpack.c.bf16 %v1201_v32, %v1200_v52  ;;  %2447 = vmatpush3.bf16.msra.mxu1 %v2511_v45  ;;  %v2525_v45 = vld [vmem:[#allocation11 + $0x34] ss:$8 sps:$4 sm:$0xff]  }
 0x539   :  { %v1452_v19 = vpop.xlane.xlu1 %1451  ;;  %2448 = vmatprep.subr.bf16.mxu1 %v2512_v10 }
 0x53a   :  { %v2619_v41 = vpop.eup %2618 }
 0x53b   :  { %v1329_v59 = vmul.f32 %v2619_v41, %v3243_v56 }
 0x53c   :  { %2449 = vmatpush3.bf16.msra.mxu1 %v2512_v10  ;;  %v2528_v10 = vld [vmem:[#allocation11 + $0x44] ss:$8 sps:$4 sm:$0xff]  }
 0x53d   :  { %v1205_v53 = vpop.permute.xlu1 %1204  ;;  %2450 = vmatprep.subr.bf16.mxu1 %v2513_v49 }
 0x53e   :  { %2407 = vmatpush3.bf16.msra.mxu0 %v1205_v53 }
 0x53f   :  { %2418 = vmatprep.subr.bf16.mxu0 %v2831_v14 }
 0x540   :  { %2451 = vmatpush3.bf16.msra.mxu1 %v2513_v49  ;;  %v2526_v49 = vld [vmem:[#allocation11 + $0x40] ss:$8 sps:$4 sm:$0xff]  }
 0x541   :  { %2409 = vmatmul.mubr.msk.bf16.vlgmr.msra.gmra.mrb[32].mxu0 %vm551_vm2, %v1202_v27 }
 0x542   :  { %2420 = vmatprep.mubr.msk.bf16.mxu0 %vm2832_vm0, %v2831_v14 }
 0x552   :  { %v1322_v55 = vpop.xlane.xlu0 %1321 }
 0x553   :  { %2620 = vrcp.f32 %v1322_v55 }
 0x554   :  { %2622 = vrcp.f32 %v1452_v19 }
 0x555   :  { %2624 = vrcp.f32 %v1449_v44 }
 0x556   :  { %v1332_v25 = vpop.permute.xlu0 %1331 }
 0x557   :  { %2419 = vmatpush3.bf16.msra.mxu0 %v1332_v25 }
 0x558   :  { %2430 = vmatprep.subr.bf16.mxu0 %v2831_v14 }
 0x55a   :  { %v1459_v33 = vpop.permute.xlu0 %1458 }
 0x55d   :  { %v2621_v48 = vpop.eup %2620 }
 0x55e   :  { %v1328_v30 = vmul.f32 %v2621_v48, %v3266_v46  ;;  %v2623_v34 = vpop.eup %2622 }
 0x55f   :  { %v2625_v62 = vpop.eup %2624  ;;  %v1456_v26 = vmul.f32 %v2623_v34, %v3258_v22 }
 0x560   :  { %v1330_v28 = vpack.c.bf16 %v1329_v59, %v1328_v30  ;;  %v1455_v36 = vmul.f32 %v2625_v62, %v3249_v60  ;;  %v2196_v62 = vld [vmem:[%s3426_s7] ss:$0 sm:$0xff] }
 0x562   :  { %2421 = vmatmul.mubr.msk.bf16.vlgmr.msra.gmra.mrb[36].mxu0 %vm551_vm2, %v1330_v28  ;;  %v1457_v63 = vpack.c.bf16 %v1456_v26, %v1455_v36 }
 0x563   :  { %2431 = vmatpush3.bf16.msra.mxu0 %v1459_v33  ;;  %2432 = vmatprep.mubr.msk.bf16.mxu0 %vm2832_vm0, %v2831_v14 }
 0x56a   :  { %2433 = vmatmul.mubr.msk.bf16.vlgmr.msra.gmra.mrb[40].mxu0 %vm551_vm2, %v1457_v63 }
 0x56b   :  { %1845 = vmatprep.mubr.bf16.mxu0 %v2830_v39 }
 0x579   :  { %v612_v56 = vpop.f32.mrb[12].mxu0 }
 0x57a   :  { %v2350_v46 = vpop.f32.mrb[13].mxu0 }
 0x57b   :  { %v615_v1 = vpop.f32.mrb[14].mxu0 }
 0x57c   :  { %v619_v42 = vpack.c.bf16 %v615_v1, %v612_v56  ;;  %v2351_v4 = vpop.f32.mrb[15].mxu0 }
 0x57e   :  { %620 = vst.msk [vmem:[#allocation2] sm:$0xff] %vm503_vm1, %v619_v42  ;;  %v2650_v42 = vld [vmem:[#allocation3] sm:$0xff] }
 0x5ec   :  { %v738_v12 = vpop.f32.mrb[16].mxu0 }
 0x5ed   :  { %v2362_v5 = vpop.f32.mrb[17].mxu0 }
 0x5ee   :  { %v741_v47 = vpop.f32.mrb[18].mxu0  ;;  %v2651_v5 = vld [vmem:[#allocation3 + $0x8] sm:$0xff] }
 0x5ef   :  { %v745_v14 = vpack.c.bf16 %v741_v47, %v738_v12  ;;  %v2363_v6 = vpop.f32.mrb[19].mxu0 }
 0x5f1   :  { %747 = vrot.lane.b32.xlu0 %v745_v14, %s2834_s20  ;;  %v2652_v14 = vld [vmem:[#allocation3 + $0x10] sm:$0xff] }
 0x5f4   :  { %v866_v60 = vpop.f32.mrb[20].mxu0 }
 0x5f5   :  { %v2374_v22 = vpop.f32.mrb[21].mxu0 }
 0x5f6   :  { %v869_v8 = vpop.f32.mrb[22].mxu0  ;;  %v2653_v22 = vld [vmem:[#allocation3 + $0x18] sm:$0xff] }
 0x5f7   :  { %v873_v9 = vpack.c.bf16 %v869_v8, %v866_v60  ;;  %v2375_v11 = vpop.f32.mrb[23].mxu0 }
 0x5f8   :  { %v2516_v11 = vld [vmem:[#allocation11 + $0x4] ss:$8 sps:$4 sm:$0xff]  }
 0x5f9   :  { %875 = vrot.lane.b32.xlu1 %v873_v9, %s3439_s10  ;;  %v2514_v9 = vld [vmem:[#allocation11] ss:$8 sps:$4 sm:$0xff]   ;;  %1813 = vmatprep.subr.bf16.mxu0 %v2516_v11 }
 0x5fa   :  { %1814 = vmatpush1.bf16.msra.mxu0 %v2514_v9 }
 0x5fc   :  { %v994_v13 = vpop.f32.mrb[24].mxu0 }
 0x5fd   :  { %v2386_v54 = vpop.f32.mrb[25].mxu0 }
 0x5fe   :  { %v997_v20 = vpop.f32.mrb[26].mxu0  ;;  %v2517_v54 = vld [vmem:[#allocation11 + $0x10] ss:$8 sps:$4 sm:$0xff]  }
 0x5ff   :  { %v1001_v21 = vpack.c.bf16 %v997_v20, %v994_v13  ;;  %v2387_v57 = vpop.f32.mrb[27].mxu0  ;;  %v2519_v13 = vld [vmem:[#allocation11 + $0x14] ss:$8 sps:$4 sm:$0xff]  }
 0x600   :  { %1815 = vmatprep.subr.bf16.mxu0 %v2519_v13 }
 0x601   :  { %1003 = vrot.lane.b32.xlu1 %v1001_v21, %s2833_s5  ;;  %1816 = vmatpush1.bf16.msra.mxu0 %v2517_v54 }
 0x604   :  { %v1118_v23 = vpop.f32.mrb[28].mxu0 }
 0x605   :  { %v2398_v58 = vpop.f32.mrb[29].mxu0 }
 0x606   :  { %v1121_v61 = vpop.f32.mrb[30].mxu0 }
 0x607   :  { %v1125_v24 = vpack.c.bf16 %v1121_v61, %v1118_v23  ;;  %v2399_v29 = vpop.f32.mrb[31].mxu0 }
 0x609   :  { %1126 = vst.msk [vmem:[#allocation2 + $0x8] sm:$0xff] %vm503_vm1, %v1125_v24 }
 0x614   :  { %v1244_v2 = vpop.f32.mrb[32].mxu0 }
 0x615   :  { %v2410_v37 = vpop.f32.mrb[33].mxu0 }
 0x616   :  { %v1247_v7 = vpop.f32.mrb[34].mxu0 }
 0x617   :  { %v1251_v38 = vpack.c.bf16 %v1247_v7, %v1244_v2  ;;  %v2411_v40 = vpop.f32.mrb[35].mxu0 }
 0x618   :  { %v2522_v40 = vld [vmem:[#allocation11 + $0x24] ss:$8 sps:$4 sm:$0xff]  }
 0x619   :  { %1253 = vrot.lane.b32.xlu0 %v1251_v38, %s2834_s20  ;;  %1817 = vmatprep.subr.bf16.mxu0 %v2522_v40  ;;  %v2551_v40 = vld [vmem:[#allocation12 + $0x30] sm:$0xff]  }
 0x61a   :  { %1818 = vmatpush1.bf16.msra.mxu0 %v2520_v43  ;;  %v2552_v43 = vld [vmem:[#allocation12 + $0x78] sm:$0xff]  }
 0x61b   :  { %1819 = vmatprep.subr.bf16.mxu0 %v2525_v45  ;;  %v2553_v45 = vld [vmem:[#allocation12 + $0x38] sm:$0xff]  }
 0x635   :  { %v1371_v17 = vpop.f32.mrb[36].mxu0 }
 0x636   :  { %v2422_v44 = vpop.f32.mrb[37].mxu0 }
 0x637   :  { %v1374_v50 = vpop.f32.mrb[38].mxu0  ;;  %v2531_v44 = vld [vmem:[#allocation11 + $0x54] ss:$8 sps:$4 sm:$0xff]  }
 0x638   :  { %v1378_v19 = vpack.c.bf16 %v1374_v50, %v1371_v17  ;;  %v2423_v51 = vpop.f32.mrb[39].mxu0  ;;  %v2523_v17 = vld [vmem:[#allocation11 + $0x30] ss:$8 sps:$4 sm:$0xff]  }
 0x639   :  { %1820 = vmatpush1.bf16.msra.mxu0 %v2523_v17  ;;  %v2529_v50 = vld [vmem:[#allocation11 + $0x50] ss:$8 sps:$4 sm:$0xff]   ;;  %v2534_v51 = vld [vmem:[#allocation11 + $0x64] ss:$8 sps:$4 sm:$0xff]  }
 0x63a   :  { %1380 = vrot.lane.b32.xlu0 %v1378_v19, %s3439_s10  ;;  %1821 = vmatprep.subr.bf16.mxu0 %v2528_v10  ;;  %v2532_v19 = vld [vmem:[#allocation11 + $0x60] ss:$8 sps:$4 sm:$0xff]   ;;  %v1721_v17 = vld [vmem:[%s3430_s11] sm:$0x3] }
 0x63b   :  { %v1726_v10 = vrot.slane %v1721_v17, %v252_v16 }
 0x63d   :  { %v1498_v32 = vpop.f32.mrb[40].mxu0  ;;  %1822 = vmatpush1.bf16.msra.mxu0 %v2526_v49  ;;  %v1730_v49 = vrot.slane %v1721_v17, %v256_v18 }
 0x63e   :  { %v2434_v52 = vpop.f32.mrb[41].mxu0  ;;  %1823 = vmatprep.subr.bf16.mxu0 %v2531_v44 }
 0x63f   :  { %v1501_v53 = vpop.f32.mrb[42].mxu0  ;;  %v2535_v52 = vld [vmem:[#allocation11 + $0x70] ss:$8 sps:$4 sm:$0xff]  }
 0x640   :  { %v1505_v27 = vpack.c.bf16 %v1501_v53, %v1498_v32  ;;  %v2435_v55 = vpop.f32.mrb[43].mxu0  ;;  %v2537_v32 = vld [vmem:[#allocation11 + $0x74] ss:$8 sps:$4 sm:$0xff]  }
 0x641   :  { %1824 = vmatpush1.bf16.msra.mxu0 %v2529_v50 }
 0x642   :  { %1507 = vrot.lane.b32.xlu1 %v1505_v27, %s2833_s5  ;;  %1825 = vmatprep.subr.bf16.mxu0 %v2534_v51 }
 0x645   :  { %1826 = vmatpush1.bf16.msra.mxu0 %v2532_v19 }
 0x646   :  { %1827 = vmatprep.subr.bf16.mxu0 %v2537_v32 }
 0x649   :  { %1828 = vmatpush1.bf16.msra.mxu0 %v2535_v52 }
 0x663   :  { %v748_v25 = vpop.permute.xlu0 %747 }
 0x664   :  { %751 = vst.msk [vmem:[#allocation2] sm:$0xff] %vm750_vm3, %v748_v25 }
 0x66b   :  { %v876_v41 = vpop.permute.xlu1 %875 }
 0x66c   :  { %879 = vst.msk [vmem:[#allocation2] sm:$0xff] %vm878_vm4, %v876_v41 }
 0x673   :  { %v1004_v48 = vpop.permute.xlu1 %1003 }
 0x674   :  { %1007 = vst.msk [vmem:[#allocation2] sm:$0xff] %vm1006_vm5, %v1004_v48 }
 0x67b   :  { %v1511_v59 = vld [vmem:[#allocation2] sm:$0xff] }
 0x67c   :  { %2452 = vmatprep.mubr.bf16.mxu1 %v1511_v59 }
 0x68b   :  { %v1254_v30 = vpop.permute.xlu0 %1253 }
 0x68c   :  { %1256 = vst.msk [vmem:[#allocation2 + $0x8] sm:$0xff] %vm750_vm3, %v1254_v30 }
 0x6ac   :  { %v1381_v28 = vpop.permute.xlu0 %1380 }
 0x6ad   :  { %1383 = vst.msk [vmem:[#allocation2 + $0x8] sm:$0xff] %vm878_vm4, %v1381_v28 }
 0x6b4   :  { %v1508_v34 = vpop.permute.xlu1 %1507 }
 0x6b5   :  { %1510 = vst.msk [vmem:[#allocation2 + $0x8] sm:$0xff] %vm1006_vm5, %v1508_v34 }
 0x6bc   :  { %v1512_v33 = vld [vmem:[#allocation2 + $0x8] sm:$0xff] }
 0x6bd   :  { %2453 = vmatmul.mubr.bf16.vlgmr.msra.gmra.mrb[32].mxu1 %v1512_v33 }
 0x790   :  { %v2454_v26 = vpop.f32.mrb[32].mxu1 }
 0x791   :  { %v1618_v36 = vpop.f32.mrb[33].mxu1  ;;  %v1627_v1 = vadd.f32 %v2454_v26, %v2196_v62 }
 0x792   :  { %v1619_v63 = vadd.f32 %v2196_v62, %v1618_v36  ;;  %v2455_v56 = vpop.f32.mrb[34].mxu1  ;;  %v2205_v36 = vld [vmem:[%s3427_s8] ss:$0 sm:$0xff] }
 0x793   :  { %v1621_v46 = vpop.f32.mrb[35].mxu1  ;;  %v3330_v6 = vadd.f32 %v2652_v14, %v1627_v1  ;;  %v1630_v60 = vadd.f32 %v2455_v56, %v2196_v62 }
 0x794   :  { %v3325_v4 = vadd.f32 %v2650_v42, %v1619_v63  ;;  %v1622_v12 = vadd.f32 %v2196_v62, %v1621_v46 }
 0x795   :  { %v3334_v8 = vadd.f32 %v2653_v22, %v1630_v60 }
 0x796   :  { %v3327_v47 = vadd.f32 %v2651_v5, %v1622_v12  ;;  %1639 = vadd.xlane.f32.xlu0 %v3325_v4  ;;  %v2206_v12 = vld [vmem:[%s3428_s9] ss:$0 sm:$0xff] }
 0x798   :  { %1641 = vadd.xlane.f32.xlu1 %v3327_v47 }
 0x79a   :  { %1643 = vadd.xlane.f32.xlu0 %v3330_v6 }
 0x79e   :  { %1645 = vadd.xlane.f32.xlu0 %v3334_v8 }
 0x823   :  { %v1640_v20 = vpop.xlane.xlu0 %1639 }
 0x824   :  { %v1647_v21 = vmul.f32 0.0078125, %v1640_v20 }
 0x825   :  { %v1642_v57 = vpop.xlane.xlu1 %1641 }
 0x826   :  { %v1651_v23 = vsub.f32 %v3325_v4, %v1647_v21  ;;  %v1648_v58 = vmul.f32 0.0078125, %v1642_v57 }
 0x827   :  { %v1644_v61 = vpop.xlane.xlu0 %1643 }
 0x828   :  { %v1652_v24 = vsub.f32 %v3327_v47, %v1648_v58  ;;  %v1649_v29 = vmul.f32 0.0078125, %v1644_v61  ;;  %v1655_v31 = vmul.f32 %v1651_v23, %v1651_v23  ;;  %v2538_v58 = vld [vmem:[#allocation12 + $0x40] sm:$0xff]  }
 0x829   :  { %v2539_v61 = vld [vmem:[#allocation12] sm:$0xff]   ;;  %2292 = vmatprep.subr.bf16.mxu1 %v2538_v58 }
 0x82a   :  { %v1653_v3 = vsub.f32 %v3330_v6, %v1649_v29  ;;  %1659 = vadd.xlane.f32.xlu0 %v1655_v31  ;;  %v1656_v35 = vmul.f32 %v1652_v24, %v1652_v24  ;;  %2293 = vmatpush3.bf16.msra.mxu1 %v2539_v61  ;;  %v2541_v29 = vld [vmem:[#allocation12 + $0x8] sm:$0xff]   ;;  %v2542_v31 = vld [vmem:[#allocation12 + $0x50] sm:$0xff]  }
 0x82b   :  { %v1646_v2 = vpop.xlane.xlu0 %1645 }
 0x82c   :  { %v1650_v0 = vmul.f32 0.0078125, %v1646_v2  ;;  %1661 = vadd.xlane.f32.xlu1 %v1656_v35  ;;  %v1657_v37 = vmul.f32 %v1653_v3, %v1653_v3  ;;  %v2544_v35 = vld [vmem:[#allocation12 + $0x58] sm:$0xff]  }
 0x82d   :  { %v2545_v2 = vld [vmem:[#allocation12 + $0x18] sm:$0xff]  }
 0x82e   :  { %v1654_v7 = vsub.f32 %v3334_v8, %v1650_v0  ;;  %1663 = vadd.xlane.f32.xlu0 %v1657_v37  ;;  %v2547_v0 = vld [vmem:[#allocation12 + $0x20] sm:$0xff]   ;;  %v2548_v37 = vld [vmem:[#allocation12 + $0x68] sm:$0xff]  }
 0x830   :  { %v1658_v38 = vmul.f32 %v1654_v7, %v1654_v7 }
 0x832   :  { %1665 = vadd.xlane.f32.xlu1 %v1658_v38  ;;  %v2550_v38 = vld [vmem:[#allocation12 + $0x70] sm:$0xff]  }
 0x8b7   :  { %v1660_v53 = vpop.xlane.xlu0 %1659 }
 0x8b8   :  { %v1667_v27 = vmul.f32 0.0078125, %v1660_v53 }
 0x8b9   :  { %v1662_v55 = vpop.xlane.xlu1 %1661 }
 0x8ba   :  { %v1671_v25 = vadd.f32 1e-06, %v1667_v27  ;;  %v1668_v41 = vmul.f32 0.0078125, %v1662_v55 }
 0x8bb   :  { %v1664_v48 = vpop.xlane.xlu0 %1663 }
 0x8bc   :  { %2626 = vrsqrt.f32 %v1671_v25  ;;  %v1672_v59 = vadd.f32 1e-06, %v1668_v41  ;;  %v1669_v30 = vmul.f32 0.0078125, %v1664_v48 }
 0x8be   :  { %2628 = vrsqrt.f32 %v1672_v59  ;;  %v1673_v28 = vadd.f32 1e-06, %v1669_v30 }
 0x8bf   :  { %v1666_v34 = vpop.xlane.xlu1 %1665 }
 0x8c0   :  { %2630 = vrsqrt.f32 %v1673_v28  ;;  %v1670_v33 = vmul.f32 0.0078125, %v1666_v34 }
 0x8c2   :  { %v1674_v62 = vadd.f32 1e-06, %v1670_v33 }
 0x8c4   :  { %2632 = vrsqrt.f32 %v1674_v62 }
 0x8c6   :  { %v2627_v26 = vpop.eup %2626 }
 0x8c7   :  { %v1679_v63 = vmul.f32 %v2627_v26, %v1651_v23 }
 0x8c8   :  { %v2629_v56 = vpop.eup %2628 }
 0x8c9   :  { %v1680_v46 = vmul.f32 %v2629_v56, %v1652_v24  ;;  %v1689_v1 = vmul.f32 %v2205_v36, %v1679_v63  ;;  %v2540_v24 = vld [vmem:[#allocation12 + $0x48] sm:$0xff]  }
 0x8ca   :  { %v2631_v42 = vpop.eup %2630  ;;  %2294 = vmatprep.subr.bf16.mxu1 %v2540_v24 }
 0x8cb   :  { %v1690_v5 = vmul.f32 %v2205_v36, %v1680_v46  ;;  %v1699_v14 = vadd.f32 %v2206_v12, %v1689_v1  ;;  %v1681_v22 = vmul.f32 %v2631_v42, %v1653_v3  ;;  %2295 = vmatpush3.bf16.msra.mxu1 %v2541_v29  ;;  %v2543_v3 = vld [vmem:[#allocation12 + $0x10] sm:$0xff]  }
 0x8cc   :  { %2296 = vmatprep.subr.bf16.mxu1 %v2542_v31 }
 0x8cd   :  { %v1700_v60 = vadd.f32 %v2206_v12, %v1690_v5  ;;  %v1691_v54 = vmul.f32 %v2205_v36, %v1681_v22 }
 0x8ce   :  { %v2633_v9 = vpop.eup %2632 }
 0x8cf   :  { %v1703_v11 = vpack.c.bf16 %v1700_v60, %v1699_v14  ;;  %v1682_v13 = vmul.f32 %v2633_v9, %v1654_v7  ;;  %v1701_v57 = vadd.f32 %v2206_v12, %v1691_v54  ;;  %2297 = vmatpush3.bf16.msra.mxu1 %v2543_v3  ;;  %v2549_v7 = vld [vmem:[#allocation12 + $0x28] sm:$0xff]  }
 0x8d0   :  { %2298 = vmatprep.subr.bf16.mxu1 %v2544_v35 }
 0x8d1   :  { %1846 = vmatmul.mubr.bf16.vlgmr.msra.gmra.mrb[44].mxu0 %v1703_v11  ;;  %v1692_v20 = vmul.f32 %v2205_v36, %v1682_v13 }
 0x8d2   :  { %1855 = vmatprep.mubr.bf16.mxu0 %v2830_v39  ;;  %v2546_v39 = vld [vmem:[#allocation12 + $0x60] sm:$0xff]  }
 0x8d3   :  { %v1702_v21 = vadd.f32 %v2206_v12, %v1692_v20  ;;  %2299 = vmatpush3.bf16.msra.mxu1 %v2545_v2 }
 0x8d4   :  { %2300 = vmatprep.subr.bf16.mxu1 %v2546_v39 }
 0x8d5   :  { %v1704_v23 = vpack.c.bf16 %v1702_v21, %v1701_v57 }
 0x8d7   :  { %2301 = vmatpush3.bf16.msra.mxu1 %v2547_v0 }
 0x8d8   :  { %2302 = vmatprep.subr.bf16.mxu1 %v2548_v37 }
 0x8d9   :  { %1856 = vmatmul.mubr.bf16.gmra.mrb[48].mxu0 %v1704_v23 }
 0x8db   :  { %2303 = vmatpush3.bf16.msra.mxu1 %v2549_v7 }
 0x8dc   :  { %2304 = vmatprep.subr.bf16.mxu1 %v2550_v38 }
 0x8df   :  { %2305 = vmatpush3.bf16.msra.mxu1 %v2551_v40 }
 0x8e0   :  { %2306 = vmatprep.subr.bf16.mxu1 %v2552_v43 }
 0x8e3   :  { %2307 = vmatpush3.bf16.msra.mxu1 %v2553_v45 }
 0x9a4   :  { %v1847_v44 = vpop.f32.mrb[44].mxu0 }
 0x9a5   :  { %v3355_v50 = vadd.f32 %v1847_v44, %v1726_v10  ;;  %v1849_v19 = vpop.f32.mrb[45].mxu0 }
 0x9a6   :  { %v3357_v51 = vadd.f32 %v1849_v19, %v1730_v49  ;;  %v1851_v32 = vpop.f32.mrb[46].mxu0 }
 0x9a7   :  { %v1874_v52 = vmul.f32 0.044715, %v3355_v50  ;;  %v3360_v53 = vadd.f32 %v1851_v32, %v1726_v10  ;;  %v1853_v27 = vpop.f32.mrb[47].mxu0  ;;  %v1866_v32 = vmul.f32 0.5, %v3355_v50 }
 0x9a8   :  { %v1875_v55 = vmul.f32 0.044715, %v3357_v51  ;;  %v3363_v25 = vadd.f32 %v1853_v27, %v1730_v49 }
 0x9a9   :  { %v1882_v16 = vmul.f32 %v1874_v52, %v3355_v50  ;;  %v1876_v15 = vmul.f32 0.044715, %v3360_v53  ;;  %v1868_v52 = vmul.f32 0.5, %v3360_v53 }
 0x9aa   :  { %v1883_v18 = vmul.f32 %v1875_v55, %v3357_v51  ;;  %v1877_v41 = vmul.f32 0.044715, %v3363_v25  ;;  %v1867_v55 = vmul.f32 0.5, %v3357_v51 }
 0x9ab   :  { %v1890_v48 = vmul.f32 %v1882_v16, %v3355_v50  ;;  %v1884_v59 = vmul.f32 %v1876_v15, %v3360_v53  ;;  %v1869_v16 = vmul.f32 0.5, %v3363_v25 }
 0x9ac   :  { %v1891_v30 = vmul.f32 %v1883_v18, %v3357_v51  ;;  %v1885_v28 = vmul.f32 %v1877_v41, %v3363_v25  ;;  %v1857_v34 = vpop.f32.mrb[48].mxu0 }
 0x9ad   :  { %v1898_v33 = vadd.f32 %v1890_v48, %v3355_v50  ;;  %v1892_v62 = vmul.f32 %v1884_v59, %v3360_v53  ;;  %v3375_v26 = vadd.f32 %v1857_v34, %v1726_v10  ;;  %v1859_v36 = vpop.f32.mrb[49].mxu0 }
 0x9ae   :  { %v1893_v63 = vmul.f32 %v1885_v28, %v3363_v25  ;;  %v3378_v56 = vadd.f32 %v1859_v36, %v1730_v49  ;;  %v1861_v46 = vpop.f32.mrb[50].mxu0  ;;  %v1899_v1 = vadd.f32 %v1891_v30, %v3357_v51 }
 0x9af   :  { %v1906_v42 = vmul.f32 0.7978846, %v1898_v33  ;;  %v1900_v12 = vadd.f32 %v1892_v62, %v3360_v53  ;;  %v1878_v5 = vmul.f32 0.044715, %v3375_v26  ;;  %v1862_v14 = vadd.f32 %v1861_v46, %v1726_v10  ;;  %v1863_v60 = vpop.f32.mrb[51].mxu0 }
 0x9b0   :  { %v1879_v22 = vmul.f32 0.044715, %v3378_v56  ;;  %v1864_v9 = vadd.f32 %v1863_v60, %v1730_v49  ;;  %v1901_v11 = vadd.f32 %v1893_v63, %v3363_v25  ;;  %v1907_v13 = vmul.f32 0.7978846, %v1899_v1 }
 0x9b1   :  { %2634 = vtanh.f32 %v1906_v42  ;;  %v1908_v54 = vmul.f32 0.7978846, %v1900_v12  ;;  %v1886_v20 = vmul.f32 %v1878_v5, %v3375_v26  ;;  %v1880_v21 = vmul.f32 0.044715, %v1862_v14 }
 0x9b2   :  { %v1887_v57 = vmul.f32 %v1879_v22, %v3378_v56  ;;  %v1881_v23 = vmul.f32 0.044715, %v1864_v9  ;;  %v1909_v58 = vmul.f32 0.7978846, %v1901_v11  ;;  %2636 = vtanh.f32 %v1907_v13 }
 0x9b3   :  { %2638 = vtanh.f32 %v1908_v54  ;;  %v1894_v61 = vmul.f32 %v1886_v20, %v3375_v26  ;;  %v1888_v24 = vmul.f32 %v1880_v21, %v1862_v14  ;;  %v1870_v53 = vmul.f32 0.5, %v3375_v26  ;;  %v2223_v20 = vld [vmem:[%s3432_s13] ss:$0 sm:$0xff]  ;;  %s2835_s13 = smov [#allocation14]  }
 0x9b4   :  { %v1895_v29 = vmul.f32 %v1887_v57, %v3378_v56  ;;  %v1889_v31 = vmul.f32 %v1881_v23, %v1864_v9  ;;  %2640 = vtanh.f32 %v1909_v58  ;;  %v1872_v51 = vmul.f32 0.5, %v1862_v14  ;;  %s2139_s1 = sshll.u32 %s2835_s13, 4  ;;  %s2140_s1 = int_to_ptr.vmem [resolvable:$true] %s2139_s1 }
 0x9b5   :  { %v1896_v3 = vmul.f32 %v1888_v24, %v1862_v14  ;;  %v1902_v35 = vadd.f32 %v1894_v61, %v3375_v26  ;;  %v1871_v25 = vmul.f32 0.5, %v3378_v56  ;;  %v1873_v1 = vmul.f32 0.5, %v1864_v9  ;;  %s2786_s6 = scalar_lea.vmem %s2140_s1, 512  ;;  %p2791_p7 = scmp.lt.s32.totalorder %s2140_s1, %s2140_s1 }
 0x9b6   :  { %v1897_v2 = vmul.f32 %v1889_v31, %v1864_v9  ;;  %v1903_v39 = vadd.f32 %v1895_v29, %v3378_v56  ;;  %p2787_p6 = scmp.ne.s32.totalorder %s2140_s1, %s2786_s6  ;;  %p2792_p8 = scmp.lt.s32.totalorder %s2786_s6, %s2786_s6 }
 0x9b7   :  { %v1904_v0 = vadd.f32 %v1896_v3, %v1862_v14  ;;  %v1910_v37 = vmul.f32 0.7978846, %v1902_v35 }
 0x9b8   :  { %v1905_v7 = vadd.f32 %v1897_v2, %v1864_v9  ;;  %v1911_v38 = vmul.f32 0.7978846, %v1903_v39  ;;  %p2793_p9 = por %p2792_p8, %p2791_p7 }
 0x9b9   :  { %v1912_v40 = vmul.f32 0.7978846, %v1904_v0  ;;  %2642 = vtanh.f32 %v1910_v37 }
 0x9ba   :  { %v1913_v43 = vmul.f32 0.7978846, %v1905_v7  ;;  %2644 = vtanh.f32 %v1911_v38  ;;  %p2794_p10 = pnand %p2793_p9, %p2787_p6 }
 0x9bb   :  { %v2635_v45 = vpop.eup %2634  ;;  %2646 = vtanh.f32 %v1912_v40 }
 0x9bc   :  { %v2637_v17 = vpop.eup %2636  ;;  %v1922_v10 = vadd.f32 1.0, %v2635_v45  ;;  %2648 = vtanh.f32 %v1913_v43 }
 0x9bd   :  { %v2639_v49 = vpop.eup %2638  ;;  %v1923_v44 = vadd.f32 1.0, %v2637_v17 }
 0x9be   :  { %v2641_v19 = vpop.eup %2640  ;;  %v1924_v27 = vadd.f32 1.0, %v2639_v49  ;;  %v1930_v18 = vmul.f32 %v1922_v10, %v1866_v32 }
 0x9bf   :  { %v1925_v15 = vadd.f32 1.0, %v2641_v19  ;;  %v1931_v48 = vmul.f32 %v1923_v44, %v1867_v55 }
 0x9c0   :  { %v1932_v41 = vmul.f32 %v1924_v27, %v1868_v52 }
 0x9c1   :  { %v1933_v59 = vmul.f32 %v1925_v15, %v1869_v16 }
 0x9c2   :  { %v1938_v30 = vpack.c.bf16 %v1932_v41, %v1930_v18 }
 0x9c3   :  { %v2643_v28 = vpop.eup %2642  ;;  %v1939_v34 = vpack.c.bf16 %v1933_v59, %v1931_v48 }
 0x9c4   :  { %v2645_v33 = vpop.eup %2644  ;;  %v1926_v62 = vadd.f32 1.0, %v2643_v28 }
 0x9c5   :  { %v2647_v36 = vpop.eup %2646  ;;  %2109 = vmatprep.mubr.bf16.mxu1 %v1939_v34  ;;  %v1927_v50 = vadd.f32 1.0, %v2645_v33 }
 0x9c6   :  { %v2649_v63 = vpop.eup %2648  ;;  %2110 = vmatmul.mubr.bf16.vlgmr.msra.gmra.mrb[36].mxu1 %v1938_v30  ;;  %v1928_v46 = vadd.f32 1.0, %v2647_v36  ;;  %v1934_v12 = vmul.f32 %v1926_v62, %v1870_v53 }
 0x9c7   :  { %v1929_v42 = vadd.f32 1.0, %v2649_v63  ;;  %v1935_v60 = vmul.f32 %v1927_v50, %v1871_v25 }
 0x9c8   :  { %v1936_v5 = vmul.f32 %v1928_v46, %v1872_v51 }
 0x9c9   :  { %v1937_v22 = vmul.f32 %v1929_v42, %v1873_v1 }
 0x9ca   :  { %v1940_v11 = vpack.c.bf16 %v1936_v5, %v1934_v12 }
 0x9cb   :  { %v1941_v13 = vpack.c.bf16 %v1937_v22, %v1935_v60 }
 0x9cd   :  { %2117 = vmatprep.mubr.bf16.mxu1 %v1941_v13 }
 0x9ce   :  { %2118 = vmatmul.mubr.bf16.gmra.mrb[40].mxu1 %v1940_v11 }
 0xa99   :  { %v2308_v54 = vpop.f32.mrb[36].mxu1 }
 0xa9a   :  { %v2309_v26 = vpop.f32.mrb[37].mxu1 }
 0xa9b   :  { %v2310_v14 = vadd.f32 %v2309_v26, %v2308_v54  ;;  %v2311_v21 = vpop.f32.mrb[38].mxu1 }
 0xa9c   :  { %v2312_v57 = vpop.f32.mrb[39].mxu1 }
 0xa9d   :  { %v2112_v56 = vadd.f32 %v2310_v14, %v2223_v20  ;;  %v2313_v9 = vadd.f32 %v2312_v57, %v2311_v21 }
 0xa9f   :  { %v2126_v23 = vadd.f32 %v2112_v56, %v3325_v4  ;;  %v2115_v58 = vadd.f32 %v2313_v9, %v2223_v20 }
 0xaa1   :  { %2130 = vst [vmem:[#allocation14] sm:$0xff] %v2126_v23  ;;  %v2127_v61 = vadd.f32 %v2115_v58, %v3327_v47  ;;  %v2314_v24 = vpop.f32.mrb[40].mxu1 }
 0xaa2   :  { %v2315_v29 = vpop.f32.mrb[41].mxu1 }
 0xaa3   :  { %2131 = vst [vmem:[#allocation14 + $0x8] sm:$0xff] %v2127_v61  ;;  %v2316_v31 = vadd.f32 %v2315_v29, %v2314_v24  ;;  %v2317_v3 = vpop.f32.mrb[42].mxu1 }
 0xaa4   :  { %v2318_v35 = vpop.f32.mrb[43].mxu1 }
 0xaa5   :  { %v2120_v2 = vadd.f32 %v2316_v31, %v2223_v20  ;;  %v2319_v39 = vadd.f32 %v2318_v35, %v2317_v3 }
 0xaa7   :  { %v2128_v0 = vadd.f32 %v2120_v2, %v3330_v6  ;;  %v2123_v37 = vadd.f32 %v2319_v39, %v2223_v20 }
 0xaa9   :  { %2132 = vst [vmem:[#allocation14 + $0x10] sm:$0xff] %v2128_v0  ;;  %v2129_v4 = vadd.f32 %v2123_v37, %v3334_v8 }
 0xaab   :  { %2133 = vst [vmem:[#allocation14 + $0x18] sm:$0xff] %v2129_v4 }
 0xaac   :  { %2797 = shalt.err (!%p2794_p10)
}
 0xaad   :  { %s2798_s25 = scalar_lea.hbm %s3433_s14, 512 }
 0xaae   :  { %p2799_p11 = scmp.ne.s32.totalorder %s3433_s14, %s2798_s25  ;;  %p2802_p12 = scmp.lt.u32.totalorder %s2798_s25, %s3433_s14 }
 0xab0   :  { %p2804_p13 = pnand %p2802_p12, %p2799_p11 }
 0xab2   :  { %2807 = shalt.err (!%p2804_p13)
}
 0xab3   :  { %2145 = dma.vmem_to_hbm [thread:$0]  %s2140_s1, 512, %s3433_s14, [#allocation5], %s3438_s16, %s3438_s16, %s2821_s26  }
 0xab4   :  { %2816 = dma.done.wait [#allocation5], 512  }
 0xab5   :  { %2817 = vsyncadd [#allocation5], 4294966784 }
 0xab6   :  { %2149 = vsyncpa [#allocation4], 1 }
 0xab7   :  { %2150 = vsyncpa [#allocation7], 1 }
 0xab8   :  { %2151 = vsyncpa [#allocation10], 1 }
 0xab9   :  { %2152 = vsyncpa [#allocation13], 1 }
 0xaba   :  { %2153 = vsyncpa [#allocation5], 1 }

</bundles_post_ra>
